<compile_context>
chip_gen: v7x
topology: tpu7x:2x2x1
jax: 0.10.0
libtpu: 0.0.40
codegen_flags: <defaults>
</compile_context>

<pallas_src>
import jax
import jax.numpy as jnp
from jax import lax
from jax.experimental import pallas as pl
from jax.experimental.pallas import tpu as pltpu


# --------------------------- fused LSTM + FC kernel ---------------------------
def _make_fused_lstm_kernel(num_layers, seq_len, batch, hidden):
    """Fused kernel: `num_layers` stacked LSTM layers + Linear(H, 1).

    Gate order inside the kernel is [i, f, o, g] (reordered in the wrapper).
    """
    B, H, T = batch, hidden, seq_len

    def kernel(*refs):
        # refs layout:
        #   [0]                 x_flat     (T*B, D0)   time-major, flattened
        #   [1]                 w_ih0_t    (D0, 4H)    layer-0 input weights
        #   [2]                 w_hh0_t    (H,  4H)    layer-0 recurrent weights
        #   [3]                 b0         (1,  4H)    layer-0 bias (b_ih+b_hh)
        #   [4 + 2(l-1)]        w_cat_l    (2H, 4H)    [W_ih_t; W_hh_t] stacked
        #   [5 + 2(l-1)]        b_l        (1,  4H)
        #   [4 + 2(L-1)]        fc_w       (1, H)
        #   [5 + 2(L-1)]        fc_b       (1, 1)
        #   [6 + 2(L-1)]        out_ref    (B, 1)
        #   [7 + 2(L-1)]        xproj_ref  (T, B, 4H)  VMEM scratch
        x_ref = refs[0]
        w_ih0 = refs[1][...]
        w_hh0 = refs[2][...]
        b0 = refs[3][...]
        deep = []
        for l in range(1, num_layers):
            w_cat = refs[4 + 2 * (l - 1)][...]                               # (2H, 4H)
            bb = jnp.broadcast_to(refs[5 + 2 * (l - 1)][...], (B, 4 * H))    # hoisted
            deep.append((w_cat, bb))
        fc_w_ref = refs[4 + 2 * (num_layers - 1)]
        fc_b_ref = refs[5 + 2 * (num_layers - 1)]
        out_ref = refs[6 + 2 * (num_layers - 1)]
        xproj_ref = refs[7 + 2 * (num_layers - 1)]

        # ---- Hoisted layer-0 input projection: one matmul, off the recurrence.
        xproj = (jnp.dot(x_ref[...], w_ih0, preferred_element_type=jnp.float32)
                 + b0)                                                       # (T*B, 4H)
        for t in range(T):                       # static, one-time scatter to scratch
            xproj_ref[t] = xproj[t * B:(t + 1) * B, :]

        def act(gates):
            # gates order [i, f, o, g]: 1 sigmoid over 3H lanes + 1 tanh over H.
            sg = jax.nn.sigmoid(gates[:, :3 * H])
            i_g = sg[:, 0 * H:1 * H]
            f_g = sg[:, 1 * H:2 * H]
            o_g = sg[:, 2 * H:3 * H]
            g_g = jnp.tanh(gates[:, 3 * H:])
            return i_g, f_g, o_g, g_g

        def body(t, carry):
            new_carry = []
            # Layer 0: single recurrent matmul; input projection + bias precomputed.
            h0, c0 = carry[0]
            gates0 = xproj_ref[t] + jnp.dot(h0, w_hh0,
                                            preferred_element_type=jnp.float32)
            i_g, f_g, o_g, g_g = act(gates0)
            c0n = f_g * c0 + i_g * g_g
            h0n = o_g * jnp.tanh(c0n)
            new_carry.append((h0n, c0n))
            inp = h0n
            # Layers >= 1: ONE merged matmul per cell on concat([x_t, h_prev]).
            for l in range(1, num_layers):
                h_p, c_p = carry[l]
                w_cat, bb = deep[l - 1]
                xh = jnp.concatenate([inp, h_p], axis=-1)                    # (B, 2H)
                gates = (jnp.dot(xh, w_cat, preferred_element_type=jnp.float32)
                         + bb)
                i_g, f_g, o_g, g_g = act(gates)
                c_n = f_g * c_p + i_g * g_g
                h_n = o_g * jnp.tanh(c_n)
                new_carry.append((h_n, c_n))
                inp = h_n
            return tuple(new_carry)

        zeros = jnp.zeros((B, H), jnp.float32)
        init = tuple((zeros, zeros) for _ in range(num_layers))
        carry = lax.fori_loop(0, T, body, init, unroll=True)

        h_last = carry[num_layers - 1][0]                                    # (B, H)
        # FC head: VPU multiply + XLU lane reduction (no N=1 MXU matvec).
        out = (jnp.sum(h_last * fc_w_ref[...], axis=-1, keepdims=True)
               + fc_b_ref[...])                                              # (B, 1)
        out_ref[...] = out.astype(out_ref.dtype)

    return kernel


# ------------------------------- model forward --------------------------------
def _gate_perm(H):
    # PyTorch gate rows are [i, f, g, o]; reorder to [i, f, o, g].
    return jnp.concatenate([jnp.arange(0, H), jnp.arange(H, 2 * H),
                            jnp.arange(3 * H, 4 * H), jnp.arange(2 * H, 3 * H)])


def lstm_model_forward(x, params):
    """x: (B, T, input_size) float32 (PyTorch batch_first) -> (B, 1)."""
    B, T, D0 = x.shape
    H = params["lstm"][0][1].shape[1]
    num_layers = len(params["lstm"])
    perm = _gate_perm(H)

    # Time-major, flattened so the layer-0 projection is one (T*B, D0) matmul.
    x_flat = jnp.transpose(x, (1, 0, 2)).reshape(T * B, D0).astype(jnp.float32)

    flat_args = [x_flat]
    for layer, (w_ih, w_hh, b_ih, b_hh) in enumerate(params["lstm"]):
        w_ih_r = jnp.asarray(w_ih, jnp.float32)[perm, :]          # (4H, D_in) reordered
        w_hh_r = jnp.asarray(w_hh, jnp.float32)[perm, :]          # (4H, H)    reordered
        b_r = (b_ih + b_hh).astype(jnp.float32)[perm].reshape(1, 4 * H)
        if layer == 0:
            flat_args.append(w_ih_r.T)                            # (D0, 4H)
            flat_args.append(w_hh_r.T)                            # (H,  4H)
            flat_args.append(b_r)                                 # (1,  4H)
        else:
            # Merged weight: gates = concat([x_t, h_prev]) @ W_cat + b
            flat_args.append(jnp.concatenate([w_ih_r.T, w_hh_r.T], axis=0))  # (2H, 4H)
            flat_args.append(b_r)                                            # (1,  4H)
    flat_args.append(params["fc_w"].astype(jnp.float32))                     # (1, H)
    flat_args.append(params["fc_b"].reshape(1, 1).astype(jnp.float32))       # (1, 1)

    kernel = _make_fused_lstm_kernel(num_layers, T, B, H)

    # No grid: the whole (tiny) problem is resident in VMEM.
    return pl.pallas_call(
        kernel,
        out_shape=jax.ShapeDtypeStruct((B, 1), jnp.float32),
        scratch_shapes=[pltpu.VMEM((T, B, 4 * H), jnp.float32)],
    )(*flat_args)


# ------------------------------ parameter init --------------------------------
def init_params(key, input_size, hidden_size, num_layers):
    params = {"lstm": []}
    k = 1.0 / jnp.sqrt(hidden_size)
    for layer in range(num_layers):
        d_in = input_size if layer == 0 else hidden_size
        key, k1, k2, k3, k4 = jax.random.split(key, 5)
        w_ih = jax.random.uniform(k1, (4 * hidden_size, d_in), jnp.float32, -k, k)
        w_hh = jax.random.uniform(k2, (4 * hidden_size, hidden_size), jnp.float32, -k, k)
        b_ih = jax.random.uniform(k3, (4 * hidden_size,), jnp.float32, -k, k)
        b_hh = jax.random.uniform(k4, (4 * hidden_size,), jnp.float32, -k, k)
        params["lstm"].append((w_ih, w_hh, b_ih, b_hh))
    key, k5, k6 = jax.random.split(key, 3)
    kf = 1.0 / jnp.sqrt(hidden_size)
    params["fc_w"] = jax.random.uniform(k5, (1, hidden_size), jnp.float32, -kf, kf)
    params["fc_b"] = jax.random.uniform(k6, (1,), jnp.float32, -kf, kf)
    return params


# --------------------------- pure-JAX reference --------------------------------
def lstm_model_reference(x, params):
    B = x.shape[0]
    h_seq = x.astype(jnp.float32)
    for (w_ih, w_hh, b_ih, b_hh) in params["lstm"]:
        H = w_hh.shape[1]
        b = b_ih + b_hh

        def step(carry, x_t):
            h, c = carry
            gates = x_t @ w_ih.T + h @ w_hh.T + b
            i = jax.nn.sigmoid(gates[:, 0 * H:1 * H])
            f = jax.nn.sigmoid(gates[:, 1 * H:2 * H])
            g = jnp.tanh(gates[:, 2 * H:3 * H])
            o = jax.nn.sigmoid(gates[:, 3 * H:4 * H])
            c = f * c + i * g
            h = o * jnp.tanh(c)
            return (h, c), h

        init = (jnp.zeros((B, H), jnp.float32), jnp.zeros((B, H), jnp.float32))
        _, hs = jax.lax.scan(step, init, jnp.transpose(h_seq, (1, 0, 2)))
        h_seq = jnp.transpose(hs, (1, 0, 2))
    return h_seq[:, -1, :] @ params["fc_w"].T + params["fc_b"]


# ----------------------------------- main --------------------------------------
if __name__ == "__main__":
    B, T, INPUT_SIZE, HIDDEN, NUM_LAYERS = 4, 8, 8, 32, 2

    key = jax.random.PRNGKey(0)
    key, kp, kx = jax.random.split(key, 3)
    params = init_params(kp, INPUT_SIZE, HIDDEN, NUM_LAYERS)
    x = jax.random.normal(kx, (B, T, INPUT_SIZE), jnp.float32)

    out = jax.jit(lambda xx: lstm_model_forward(xx, params))(x)
    out = jax.block_until_ready(out)
    assert out.shape == (B, 1), out.shape

    ref = jax.block_until_ready(lstm_model_reference(x, params))
    assert jnp.allclose(out, ref, rtol=1e-3, atol=1e-3), (out, ref)

    print("KERNEL_OK")
</pallas_src>

<mosaic_0001>
module attributes {stable_mosaic.version = 11 : i64} {
  func.func @kernel(%arg0: memref<32x8xf32, #tpu.memory_space<vmem>>, %arg1: memref<8x128xf32, #tpu.memory_space<vmem>>, %arg2: memref<32x128xf32, #tpu.memory_space<vmem>>, %arg3: memref<1x128xf32, #tpu.memory_space<vmem>>, %arg4: memref<64x128xf32, #tpu.memory_space<vmem>>, %arg5: memref<1x128xf32, #tpu.memory_space<vmem>>, %arg6: memref<1x32xf32, #tpu.memory_space<vmem>>, %arg7: memref<1x1xf32, #tpu.memory_space<vmem>>, %arg8: memref<4x1xf32, #tpu.memory_space<vmem>>, %arg9: memref<8x4x128xf32, #tpu.memory_space<vmem>>) attributes {dimension_semantics = [], scalar_prefetch = 0 : i64, scratch_operands = 1 : i64, tpu.core_type = #tpu.core_type<tc>} {
    %c0 = arith.constant 0 : index
    %c0_0 = arith.constant 0 : index
    %0 = vector.load %arg1[%c0, %c0_0] : memref<8x128xf32, #tpu.memory_space<vmem>>, vector<8x128xf32>
    %c0_1 = arith.constant 0 : index
    %c0_2 = arith.constant 0 : index
    %1 = vector.load %arg2[%c0_1, %c0_2] : memref<32x128xf32, #tpu.memory_space<vmem>>, vector<32x128xf32>
    %c0_3 = arith.constant 0 : index
    %c0_4 = arith.constant 0 : index
    %2 = vector.load %arg3[%c0_3, %c0_4] : memref<1x128xf32, #tpu.memory_space<vmem>>, vector<1x128xf32>
    %c0_5 = arith.constant 0 : index
    %c0_6 = arith.constant 0 : index
    %3 = vector.load %arg4[%c0_5, %c0_6] : memref<64x128xf32, #tpu.memory_space<vmem>>, vector<64x128xf32>
    %c0_7 = arith.constant 0 : index
    %c0_8 = arith.constant 0 : index
    %4 = vector.load %arg5[%c0_7, %c0_8] : memref<1x128xf32, #tpu.memory_space<vmem>>, vector<1x128xf32>
    %5 = vector.shape_cast %4 : vector<1x128xf32> to vector<1x128xf32>
    %6 = vector.broadcast %5 : vector<1x128xf32> to vector<4x128xf32>
    %c0_9 = arith.constant 0 : index
    %c0_10 = arith.constant 0 : index
    %7 = vector.load %arg0[%c0_9, %c0_10] : memref<32x8xf32, #tpu.memory_space<vmem>>, vector<32x8xf32>
    %cst = arith.constant dense<0.000000e+00> : vector<32x128xf32>
    %8 = tpu.matmul %7, %0, %cst {dimension_numbers = #tpu.dot_dimension_numbers<[1], [0], [0], [1], [0, 0, 1, 1], [], []>} : vector<32x8xf32>, vector<8x128xf32>, vector<32x128xf32> -> vector<32x128xf32>
    %9 = vector.broadcast %2 : vector<1x128xf32> to vector<32x128xf32>
    %10 = arith.addf %8, %9 : vector<32x128xf32>
    %11 = vector.extract_strided_slice %10 {offsets = [0, 0], sizes = [4, 128], strides = [1, 1]} : vector<32x128xf32> to vector<4x128xf32>
    %c0_11 = arith.constant 0 : index
    %c0_12 = arith.constant 0 : index
    %c0_13 = arith.constant 0 : index
    %12 = vector.load %arg9[%c0_11, %c0_12, %c0_13] : memref<8x4x128xf32, #tpu.memory_space<vmem>>, vector<1x4x128xf32>
    %13 = vector.shape_cast %12 : vector<1x4x128xf32> to vector<4x128xf32>
    %14 = vector.shape_cast %11 : vector<4x128xf32> to vector<1x4x128xf32>
    tpu.vector_store %arg9[%c0_11, %c0_12, %c0_13], %14 {strides = array<i32>} : memref<8x4x128xf32, #tpu.memory_space<vmem>>, vector<1x4x128xf32>,
    %15 = vector.extract_strided_slice %10 {offsets = [4, 0], sizes = [4, 128], strides = [1, 1]} : vector<32x128xf32> to vector<4x128xf32>
    %c1 = arith.constant 1 : index
    %c0_14 = arith.constant 0 : index
    %c0_15 = arith.constant 0 : index
    %16 = vector.load %arg9[%c1, %c0_14, %c0_15] : memref<8x4x128xf32, #tpu.memory_space<vmem>>, vector<1x4x128xf32>
    %17 = vector.shape_cast %16 : vector<1x4x128xf32> to vector<4x128xf32>
    %18 = vector.shape_cast %15 : vector<4x128xf32> to vector<1x4x128xf32>
    tpu.vector_store %arg9[%c1, %c0_14, %c0_15], %18 {strides = array<i32>} : memref<8x4x128xf32, #tpu.memory_space<vmem>>, vector<1x4x128xf32>,
    %19 = vector.extract_strided_slice %10 {offsets = [8, 0], sizes = [4, 128], strides = [1, 1]} : vector<32x128xf32> to vector<4x128xf32>
    %c2 = arith.constant 2 : index
    %c0_16 = arith.constant 0 : index
    %c0_17 = arith.constant 0 : index
    %20 = vector.load %arg9[%c2, %c0_16, %c0_17] : memref<8x4x128xf32, #tpu.memory_space<vmem>>, vector<1x4x128xf32>
    %21 = vector.shape_cast %20 : vector<1x4x128xf32> to vector<4x128xf32>
    %22 = vector.shape_cast %19 : vector<4x128xf32> to vector<1x4x128xf32>
    tpu.vector_store %arg9[%c2, %c0_16, %c0_17], %22 {strides = array<i32>} : memref<8x4x128xf32, #tpu.memory_space<vmem>>, vector<1x4x128xf32>,
    %23 = vector.extract_strided_slice %10 {offsets = [12, 0], sizes = [4, 128], strides = [1, 1]} : vector<32x128xf32> to vector<4x128xf32>
    %c3 = arith.constant 3 : index
    %c0_18 = arith.constant 0 : index
    %c0_19 = arith.constant 0 : index
    %24 = vector.load %arg9[%c3, %c0_18, %c0_19] : memref<8x4x128xf32, #tpu.memory_space<vmem>>, vector<1x4x128xf32>
    %25 = vector.shape_cast %24 : vector<1x4x128xf32> to vector<4x128xf32>
    %26 = vector.shape_cast %23 : vector<4x128xf32> to vector<1x4x128xf32>
    tpu.vector_store %arg9[%c3, %c0_18, %c0_19], %26 {strides = array<i32>} : memref<8x4x128xf32, #tpu.memory_space<vmem>>, vector<1x4x128xf32>,
    %27 = vector.extract_strided_slice %10 {offsets = [16, 0], sizes = [4, 128], strides = [1, 1]} : vector<32x128xf32> to vector<4x128xf32>
    %c4 = arith.constant 4 : index
    %c0_20 = arith.constant 0 : index
    %c0_21 = arith.constant 0 : index
    %28 = vector.load %arg9[%c4, %c0_20, %c0_21] : memref<8x4x128xf32, #tpu.memory_space<vmem>>, vector<1x4x128xf32>
    %29 = vector.shape_cast %28 : vector<1x4x128xf32> to vector<4x128xf32>
    %30 = vector.shape_cast %27 : vector<4x128xf32> to vector<1x4x128xf32>
    tpu.vector_store %arg9[%c4, %c0_20, %c0_21], %30 {strides = array<i32>} : memref<8x4x128xf32, #tpu.memory_space<vmem>>, vector<1x4x128xf32>,
    %31 = vector.extract_strided_slice %10 {offsets = [20, 0], sizes = [4, 128], strides = [1, 1]} : vector<32x128xf32> to vector<4x128xf32>
    %c5 = arith.constant 5 : index
    %c0_22 = arith.constant 0 : index
    %c0_23 = arith.constant 0 : index
    %32 = vector.load %arg9[%c5, %c0_22, %c0_23] : memref<8x4x128xf32, #tpu.memory_space<vmem>>, vector<1x4x128xf32>
    %33 = vector.shape_cast %32 : vector<1x4x128xf32> to vector<4x128xf32>
    %34 = vector.shape_cast %31 : vector<4x128xf32> to vector<1x4x128xf32>
    tpu.vector_store %arg9[%c5, %c0_22, %c0_23], %34 {strides = array<i32>} : memref<8x4x128xf32, #tpu.memory_space<vmem>>, vector<1x4x128xf32>,
    %35 = vector.extract_strided_slice %10 {offsets = [24, 0], sizes = [4, 128], strides = [1, 1]} : vector<32x128xf32> to vector<4x128xf32>
    %c6 = arith.constant 6 : index
    %c0_24 = arith.constant 0 : index
    %c0_25 = arith.constant 0 : index
    %36 = vector.load %arg9[%c6, %c0_24, %c0_25] : memref<8x4x128xf32, #tpu.memory_space<vmem>>, vector<1x4x128xf32>
    %37 = vector.shape_cast %36 : vector<1x4x128xf32> to vector<4x128xf32>
    %38 = vector.shape_cast %35 : vector<4x128xf32> to vector<1x4x128xf32>
    tpu.vector_store %arg9[%c6, %c0_24, %c0_25], %38 {strides = array<i32>} : memref<8x4x128xf32, #tpu.memory_space<vmem>>, vector<1x4x128xf32>,
    %39 = vector.extract_strided_slice %10 {offsets = [28, 0], sizes = [4, 128], strides = [1, 1]} : vector<32x128xf32> to vector<4x128xf32>
    %c7 = arith.constant 7 : index
    %c0_26 = arith.constant 0 : index
    %c0_27 = arith.constant 0 : index
    %40 = vector.load %arg9[%c7, %c0_26, %c0_27] : memref<8x4x128xf32, #tpu.memory_space<vmem>>, vector<1x4x128xf32>
    %41 = vector.shape_cast %40 : vector<1x4x128xf32> to vector<4x128xf32>
    %42 = vector.shape_cast %39 : vector<4x128xf32> to vector<1x4x128xf32>
    tpu.vector_store %arg9[%c7, %c0_26, %c0_27], %42 {strides = array<i32>} : memref<8x4x128xf32, #tpu.memory_space<vmem>>, vector<1x4x128xf32>,
    %cst_28 = arith.constant 0.000000e+00 : f32
    %43 = vector.broadcast %cst_28 : f32 to vector<4x32xf32>
    %c0_i32 = arith.constant 0 : i32
    %44 = arith.index_cast %c0_i32 : i32 to index
    %c0_29 = arith.constant 0 : index
    %c0_30 = arith.constant 0 : index
    %45 = vector.load %arg9[%44, %c0_29, %c0_30] : memref<8x4x128xf32, #tpu.memory_space<vmem>>, vector<1x4x128xf32>
    %46 = vector.shape_cast %45 : vector<1x4x128xf32> to vector<4x128xf32>
    %cst_31 = arith.constant dense<0.000000e+00> : vector<4x128xf32>
    %47 = tpu.matmul %43, %1, %cst_31 {dimension_numbers = #tpu.dot_dimension_numbers<[1], [0], [0], [1], [0, 0, 1, 1], [], []>} : vector<4x32xf32>, vector<32x128xf32>, vector<4x128xf32> -> vector<4x128xf32>
    %48 = arith.addf %46, %47 : vector<4x128xf32>
    %49 = vector.extract_strided_slice %48 {offsets = [0, 0], sizes = [4, 96], strides = [1, 1]} : vector<4x128xf32> to vector<4x96xf32>
    %50 = arith.negf %49 : vector<4x96xf32>
    %51 = math.exp %50 : vector<4x96xf32>
    %cst_32 = arith.constant 1.000000e+00 : f32
    %52 = vector.broadcast %cst_32 : f32 to vector<4x96xf32>
    %53 = arith.addf %52, %51 : vector<4x96xf32>
    %54 = arith.divf %52, %53 : vector<4x96xf32>
    %55 = vector.extract_strided_slice %54 {offsets = [0, 0], sizes = [4, 32], strides = [1, 1]} : vector<4x96xf32> to vector<4x32xf32>
    %56 = vector.extract_strided_slice %54 {offsets = [0, 32], sizes = [4, 32], strides = [1, 1]} : vector<4x96xf32> to vector<4x32xf32>
    %57 = vector.extract_strided_slice %54 {offsets = [0, 64], sizes = [4, 32], strides = [1, 1]} : vector<4x96xf32> to vector<4x32xf32>
    %58 = vector.extract_strided_slice %48 {offsets = [0, 96], sizes = [4, 32], strides = [1, 1]} : vector<4x128xf32> to vector<4x32xf32>
    %59 = math.tanh %58 : vector<4x32xf32>
    %60 = arith.mulf %56, %43 : vector<4x32xf32>
    %61 = arith.mulf %55, %59 : vector<4x32xf32>
    %62 = arith.addf %60, %61 : vector<4x32xf32>
    %63 = math.tanh %62 : vector<4x32xf32>
    %64 = arith.mulf %57, %63 : vector<4x32xf32>
    %65 = tpu.concatenate %64, %43 in 1 : vector<4x32xf32>, vector<4x32xf32> -> vector<4x64xf32>
    %cst_33 = arith.constant dense<0.000000e+00> : vector<4x128xf32>
    %66 = tpu.matmul %65, %3, %cst_33 {dimension_numbers = #tpu.dot_dimension_numbers<[1], [0], [0], [1], [0, 0, 1, 1], [], []>} : vector<4x64xf32>, vector<64x128xf32>, vector<4x128xf32> -> vector<4x128xf32>
    %67 = arith.addf %66, %6 : vector<4x128xf32>
    %68 = vector.extract_strided_slice %67 {offsets = [0, 0], sizes = [4, 96], strides = [1, 1]} : vector<4x128xf32> to vector<4x96xf32>
    %69 = arith.negf %68 : vector<4x96xf32>
    %70 = math.exp %69 : vector<4x96xf32>
    %cst_34 = arith.constant 1.000000e+00 : f32
    %71 = vector.broadcast %cst_34 : f32 to vector<4x96xf32>
    %72 = arith.addf %71, %70 : vector<4x96xf32>
    %73 = arith.divf %71, %72 : vector<4x96xf32>
    %74 = vector.extract_strided_slice %73 {offsets = [0, 0], sizes = [4, 32], strides = [1, 1]} : vector<4x96xf32> to vector<4x32xf32>
    %75 = vector.extract_strided_slice %73 {offsets = [0, 32], sizes = [4, 32], strides = [1, 1]} : vector<4x96xf32> to vector<4x32xf32>
    %76 = vector.extract_strided_slice %73 {offsets = [0, 64], sizes = [4, 32], strides = [1, 1]} : vector<4x96xf32> to vector<4x32xf32>
    %77 = vector.extract_strided_slice %67 {offsets = [0, 96], sizes = [4, 32], strides = [1, 1]} : vector<4x128xf32> to vector<4x32xf32>
    %78 = math.tanh %77 : vector<4x32xf32>
    %79 = arith.mulf %75, %43 : vector<4x32xf32>
    %80 = arith.mulf %74, %78 : vector<4x32xf32>
    %81 = arith.addf %79, %80 : vector<4x32xf32>
    %82 = math.tanh %81 : vector<4x32xf32>
    %83 = arith.mulf %76, %82 : vector<4x32xf32>
    %c1_i32 = arith.constant 1 : i32
    %84 = arith.index_cast %c1_i32 : i32 to index
    %c0_35 = arith.constant 0 : index
    %c0_36 = arith.constant 0 : index
    %85 = vector.load %arg9[%84, %c0_35, %c0_36] : memref<8x4x128xf32, #tpu.memory_space<vmem>>, vector<1x4x128xf32>
    %86 = vector.shape_cast %85 : vector<1x4x128xf32> to vector<4x128xf32>
    %cst_37 = arith.constant dense<0.000000e+00> : vector<4x128xf32>
    %87 = tpu.matmul %64, %1, %cst_37 {dimension_numbers = #tpu.dot_dimension_numbers<[1], [0], [0], [1], [0, 0, 1, 1], [], []>} : vector<4x32xf32>, vector<32x128xf32>, vector<4x128xf32> -> vector<4x128xf32>
    %88 = arith.addf %86, %87 : vector<4x128xf32>
    %89 = vector.extract_strided_slice %88 {offsets = [0, 0], sizes = [4, 96], strides = [1, 1]} : vector<4x128xf32> to vector<4x96xf32>
    %90 = arith.negf %89 : vector<4x96xf32>
    %91 = math.exp %90 : vector<4x96xf32>
    %cst_38 = arith.constant 1.000000e+00 : f32
    %92 = vector.broadcast %cst_38 : f32 to vector<4x96xf32>
    %93 = arith.addf %92, %91 : vector<4x96xf32>
    %94 = arith.divf %92, %93 : vector<4x96xf32>
    %95 = vector.extract_strided_slice %94 {offsets = [0, 0], sizes = [4, 32], strides = [1, 1]} : vector<4x96xf32> to vector<4x32xf32>
    %96 = vector.extract_strided_slice %94 {offsets = [0, 32], sizes = [4, 32], strides = [1, 1]} : vector<4x96xf32> to vector<4x32xf32>
    %97 = vector.extract_strided_slice %94 {offsets = [0, 64], sizes = [4, 32], strides = [1, 1]} : vector<4x96xf32> to vector<4x32xf32>
    %98 = vector.extract_strided_slice %88 {offsets = [0, 96], sizes = [4, 32], strides = [1, 1]} : vector<4x128xf32> to vector<4x32xf32>
    %99 = math.tanh %98 : vector<4x32xf32>
    %100 = arith.mulf %96, %62 : vector<4x32xf32>
    %101 = arith.mulf %95, %99 : vector<4x32xf32>
    %102 = arith.addf %100, %101 : vector<4x32xf32>
    %103 = math.tanh %102 : vector<4x32xf32>
    %104 = arith.mulf %97, %103 : vector<4x32xf32>
    %105 = tpu.concatenate %104, %83 in 1 : vector<4x32xf32>, vector<4x32xf32> -> vector<4x64xf32>
    %cst_39 = arith.constant dense<0.000000e+00> : vector<4x128xf32>
    %106 = tpu.matmul %105, %3, %cst_39 {dimension_numbers = #tpu.dot_dimension_numbers<[1], [0], [0], [1], [0, 0, 1, 1], [], []>} : vector<4x64xf32>, vector<64x128xf32>, vector<4x128xf32> -> vector<4x128xf32>
    %107 = arith.addf %106, %6 : vector<4x128xf32>
    %108 = vector.extract_strided_slice %107 {offsets = [0, 0], sizes = [4, 96], strides = [1, 1]} : vector<4x128xf32> to vector<4x96xf32>
    %109 = arith.negf %108 : vector<4x96xf32>
    %110 = math.exp %109 : vector<4x96xf32>
    %cst_40 = arith.constant 1.000000e+00 : f32
    %111 = vector.broadcast %cst_40 : f32 to vector<4x96xf32>
    %112 = arith.addf %111, %110 : vector<4x96xf32>
    %113 = arith.divf %111, %112 : vector<4x96xf32>
    %114 = vector.extract_strided_slice %113 {offsets = [0, 0], sizes = [4, 32], strides = [1, 1]} : vector<4x96xf32> to vector<4x32xf32>
    %115 = vector.extract_strided_slice %113 {offsets = [0, 32], sizes = [4, 32], strides = [1, 1]} : vector<4x96xf32> to vector<4x32xf32>
    %116 = vector.extract_strided_slice %113 {offsets = [0, 64], sizes = [4, 32], strides = [1, 1]} : vector<4x96xf32> to vector<4x32xf32>
    %117 = vector.extract_strided_slice %107 {offsets = [0, 96], sizes = [4, 32], strides = [1, 1]} : vector<4x128xf32> to vector<4x32xf32>
    %118 = math.tanh %117 : vector<4x32xf32>
    %119 = arith.mulf %115, %81 : vector<4x32xf32>
    %120 = arith.mulf %114, %118 : vector<4x32xf32>
    %121 = arith.addf %119, %120 : vector<4x32xf32>
    %122 = math.tanh %121 : vector<4x32xf32>
    %123 = arith.mulf %116, %122 : vector<4x32xf32>
    %c2_i32 = arith.constant 2 : i32
    %124 = arith.index_cast %c2_i32 : i32 to index
    %c0_41 = arith.constant 0 : index
    %c0_42 = arith.constant 0 : index
    %125 = vector.load %arg9[%124, %c0_41, %c0_42] : memref<8x4x128xf32, #tpu.memory_space<vmem>>, vector<1x4x128xf32>
    %126 = vector.shape_cast %125 : vector<1x4x128xf32> to vector<4x128xf32>
    %cst_43 = arith.constant dense<0.000000e+00> : vector<4x128xf32>
    %127 = tpu.matmul %104, %1, %cst_43 {dimension_numbers = #tpu.dot_dimension_numbers<[1], [0], [0], [1], [0, 0, 1, 1], [], []>} : vector<4x32xf32>, vector<32x128xf32>, vector<4x128xf32> -> vector<4x128xf32>
    %128 = arith.addf %126, %127 : vector<4x128xf32>
    %129 = vector.extract_strided_slice %128 {offsets = [0, 0], sizes = [4, 96], strides = [1, 1]} : vector<4x128xf32> to vector<4x96xf32>
    %130 = arith.negf %129 : vector<4x96xf32>
    %131 = math.exp %130 : vector<4x96xf32>
    %cst_44 = arith.constant 1.000000e+00 : f32
    %132 = vector.broadcast %cst_44 : f32 to vector<4x96xf32>
    %133 = arith.addf %132, %131 : vector<4x96xf32>
    %134 = arith.divf %132, %133 : vector<4x96xf32>
    %135 = vector.extract_strided_slice %134 {offsets = [0, 0], sizes = [4, 32], strides = [1, 1]} : vector<4x96xf32> to vector<4x32xf32>
    %136 = vector.extract_strided_slice %134 {offsets = [0, 32], sizes = [4, 32], strides = [1, 1]} : vector<4x96xf32> to vector<4x32xf32>
    %137 = vector.extract_strided_slice %134 {offsets = [0, 64], sizes = [4, 32], strides = [1, 1]} : vector<4x96xf32> to vector<4x32xf32>
    %138 = vector.extract_strided_slice %128 {offsets = [0, 96], sizes = [4, 32], strides = [1, 1]} : vector<4x128xf32> to vector<4x32xf32>
    %139 = math.tanh %138 : vector<4x32xf32>
    %140 = arith.mulf %136, %102 : vector<4x32xf32>
    %141 = arith.mulf %135, %139 : vector<4x32xf32>
    %142 = arith.addf %140, %141 : vector<4x32xf32>
    %143 = math.tanh %142 : vector<4x32xf32>
    %144 = arith.mulf %137, %143 : vector<4x32xf32>
    %145 = tpu.concatenate %144, %123 in 1 : vector<4x32xf32>, vector<4x32xf32> -> vector<4x64xf32>
    %cst_45 = arith.constant dense<0.000000e+00> : vector<4x128xf32>
    %146 = tpu.matmul %145, %3, %cst_45 {dimension_numbers = #tpu.dot_dimension_numbers<[1], [0], [0], [1], [0, 0, 1, 1], [], []>} : vector<4x64xf32>, vector<64x128xf32>, vector<4x128xf32> -> vector<4x128xf32>
    %147 = arith.addf %146, %6 : vector<4x128xf32>
    %148 = vector.extract_strided_slice %147 {offsets = [0, 0], sizes = [4, 96], strides = [1, 1]} : vector<4x128xf32> to vector<4x96xf32>
    %149 = arith.negf %148 : vector<4x96xf32>
    %150 = math.exp %149 : vector<4x96xf32>
    %cst_46 = arith.constant 1.000000e+00 : f32
    %151 = vector.broadcast %cst_46 : f32 to vector<4x96xf32>
    %152 = arith.addf %151, %150 : vector<4x96xf32>
    %153 = arith.divf %151, %152 : vector<4x96xf32>
    %154 = vector.extract_strided_slice %153 {offsets = [0, 0], sizes = [4, 32], strides = [1, 1]} : vector<4x96xf32> to vector<4x32xf32>
    %155 = vector.extract_strided_slice %153 {offsets = [0, 32], sizes = [4, 32], strides = [1, 1]} : vector<4x96xf32> to vector<4x32xf32>
    %156 = vector.extract_strided_slice %153 {offsets = [0, 64], sizes = [4, 32], strides = [1, 1]} : vector<4x96xf32> to vector<4x32xf32>
    %157 = vector.extract_strided_slice %147 {offsets = [0, 96], sizes = [4, 32], strides = [1, 1]} : vector<4x128xf32> to vector<4x32xf32>
    %158 = math.tanh %157 : vector<4x32xf32>
    %159 = arith.mulf %155, %121 : vector<4x32xf32>
    %160 = arith.mulf %154, %158 : vector<4x32xf32>
    %161 = arith.addf %159, %160 : vector<4x32xf32>
    %162 = math.tanh %161 : vector<4x32xf32>
    %163 = arith.mulf %156, %162 : vector<4x32xf32>
    %c3_i32 = arith.constant 3 : i32
    %164 = arith.index_cast %c3_i32 : i32 to index
    %c0_47 = arith.constant 0 : index
    %c0_48 = arith.constant 0 : index
    %165 = vector.load %arg9[%164, %c0_47, %c0_48] : memref<8x4x128xf32, #tpu.memory_space<vmem>>, vector<1x4x128xf32>
    %166 = vector.shape_cast %165 : vector<1x4x128xf32> to vector<4x128xf32>
    %cst_49 = arith.constant dense<0.000000e+00> : vector<4x128xf32>
    %167 = tpu.matmul %144, %1, %cst_49 {dimension_numbers = #tpu.dot_dimension_numbers<[1], [0], [0], [1], [0, 0, 1, 1], [], []>} : vector<4x32xf32>, vector<32x128xf32>, vector<4x128xf32> -> vector<4x128xf32>
    %168 = arith.addf %166, %167 : vector<4x128xf32>
    %169 = vector.extract_strided_slice %168 {offsets = [0, 0], sizes = [4, 96], strides = [1, 1]} : vector<4x128xf32> to vector<4x96xf32>
    %170 = arith.negf %169 : vector<4x96xf32>
    %171 = math.exp %170 : vector<4x96xf32>
    %cst_50 = arith.constant 1.000000e+00 : f32
    %172 = vector.broadcast %cst_50 : f32 to vector<4x96xf32>
    %173 = arith.addf %172, %171 : vector<4x96xf32>
    %174 = arith.divf %172, %173 : vector<4x96xf32>
    %175 = vector.extract_strided_slice %174 {offsets = [0, 0], sizes = [4, 32], strides = [1, 1]} : vector<4x96xf32> to vector<4x32xf32>
    %176 = vector.extract_strided_slice %174 {offsets = [0, 32], sizes = [4, 32], strides = [1, 1]} : vector<4x96xf32> to vector<4x32xf32>
    %177 = vector.extract_strided_slice %174 {offsets = [0, 64], sizes = [4, 32], strides = [1, 1]} : vector<4x96xf32> to vector<4x32xf32>
    %178 = vector.extract_strided_slice %168 {offsets = [0, 96], sizes = [4, 32], strides = [1, 1]} : vector<4x128xf32> to vector<4x32xf32>
    %179 = math.tanh %178 : vector<4x32xf32>
    %180 = arith.mulf %176, %142 : vector<4x32xf32>
    %181 = arith.mulf %175, %179 : vector<4x32xf32>
    %182 = arith.addf %180, %181 : vector<4x32xf32>
    %183 = math.tanh %182 : vector<4x32xf32>
    %184 = arith.mulf %177, %183 : vector<4x32xf32>
    %185 = tpu.concatenate %184, %163 in 1 : vector<4x32xf32>, vector<4x32xf32> -> vector<4x64xf32>
    %cst_51 = arith.constant dense<0.000000e+00> : vector<4x128xf32>
    %186 = tpu.matmul %185, %3, %cst_51 {dimension_numbers = #tpu.dot_dimension_numbers<[1], [0], [0], [1], [0, 0, 1, 1], [], []>} : vector<4x64xf32>, vector<64x128xf32>, vector<4x128xf32> -> vector<4x128xf32>
    %187 = arith.addf %186, %6 : vector<4x128xf32>
    %188 = vector.extract_strided_slice %187 {offsets = [0, 0], sizes = [4, 96], strides = [1, 1]} : vector<4x128xf32> to vector<4x96xf32>
    %189 = arith.negf %188 : vector<4x96xf32>
    %190 = math.exp %189 : vector<4x96xf32>
    %cst_52 = arith.constant 1.000000e+00 : f32
    %191 = vector.broadcast %cst_52 : f32 to vector<4x96xf32>
    %192 = arith.addf %191, %190 : vector<4x96xf32>
    %193 = arith.divf %191, %192 : vector<4x96xf32>
    %194 = vector.extract_strided_slice %193 {offsets = [0, 0], sizes = [4, 32], strides = [1, 1]} : vector<4x96xf32> to vector<4x32xf32>
    %195 = vector.extract_strided_slice %193 {offsets = [0, 32], sizes = [4, 32], strides = [1, 1]} : vector<4x96xf32> to vector<4x32xf32>
    %196 = vector.extract_strided_slice %193 {offsets = [0, 64], sizes = [4, 32], strides = [1, 1]} : vector<4x96xf32> to vector<4x32xf32>
    %197 = vector.extract_strided_slice %187 {offsets = [0, 96], sizes = [4, 32], strides = [1, 1]} : vector<4x128xf32> to vector<4x32xf32>
    %198 = math.tanh %197 : vector<4x32xf32>
    %199 = arith.mulf %195, %161 : vector<4x32xf32>
    %200 = arith.mulf %194, %198 : vector<4x32xf32>
    %201 = arith.addf %199, %200 : vector<4x32xf32>
    %202 = math.tanh %201 : vector<4x32xf32>
    %203 = arith.mulf %196, %202 : vector<4x32xf32>
    %c4_i32 = arith.constant 4 : i32
    %204 = arith.index_cast %c4_i32 : i32 to index
    %c0_53 = arith.constant 0 : index
    %c0_54 = arith.constant 0 : index
    %205 = vector.load %arg9[%204, %c0_53, %c0_54] : memref<8x4x128xf32, #tpu.memory_space<vmem>>, vector<1x4x128xf32>
    %206 = vector.shape_cast %205 : vector<1x4x128xf32> to vector<4x128xf32>
    %cst_55 = arith.constant dense<0.000000e+00> : vector<4x128xf32>
    %207 = tpu.matmul %184, %1, %cst_55 {dimension_numbers = #tpu.dot_dimension_numbers<[1], [0], [0], [1], [0, 0, 1, 1], [], []>} : vector<4x32xf32>, vector<32x128xf32>, vector<4x128xf32> -> vector<4x128xf32>
    %208 = arith.addf %206, %207 : vector<4x128xf32>
    %209 = vector.extract_strided_slice %208 {offsets = [0, 0], sizes = [4, 96], strides = [1, 1]} : vector<4x128xf32> to vector<4x96xf32>
    %210 = arith.negf %209 : vector<4x96xf32>
    %211 = math.exp %210 : vector<4x96xf32>
    %cst_56 = arith.constant 1.000000e+00 : f32
    %212 = vector.broadcast %cst_56 : f32 to vector<4x96xf32>
    %213 = arith.addf %212, %211 : vector<4x96xf32>
    %214 = arith.divf %212, %213 : vector<4x96xf32>
    %215 = vector.extract_strided_slice %214 {offsets = [0, 0], sizes = [4, 32], strides = [1, 1]} : vector<4x96xf32> to vector<4x32xf32>
    %216 = vector.extract_strided_slice %214 {offsets = [0, 32], sizes = [4, 32], strides = [1, 1]} : vector<4x96xf32> to vector<4x32xf32>
    %217 = vector.extract_strided_slice %214 {offsets = [0, 64], sizes = [4, 32], strides = [1, 1]} : vector<4x96xf32> to vector<4x32xf32>
    %218 = vector.extract_strided_slice %208 {offsets = [0, 96], sizes = [4, 32], strides = [1, 1]} : vector<4x128xf32> to vector<4x32xf32>
    %219 = math.tanh %218 : vector<4x32xf32>
    %220 = arith.mulf %216, %182 : vector<4x32xf32>
    %221 = arith.mulf %215, %219 : vector<4x32xf32>
    %222 = arith.addf %220, %221 : vector<4x32xf32>
    %223 = math.tanh %222 : vector<4x32xf32>
    %224 = arith.mulf %217, %223 : vector<4x32xf32>
    %225 = tpu.concatenate %224, %203 in 1 : vector<4x32xf32>, vector<4x32xf32> -> vector<4x64xf32>
    %cst_57 = arith.constant dense<0.000000e+00> : vector<4x128xf32>
    %226 = tpu.matmul %225, %3, %cst_57 {dimension_numbers = #tpu.dot_dimension_numbers<[1], [0], [0], [1], [0, 0, 1, 1], [], []>} : vector<4x64xf32>, vector<64x128xf32>, vector<4x128xf32> -> vector<4x128xf32>
    %227 = arith.addf %226, %6 : vector<4x128xf32>
    %228 = vector.extract_strided_slice %227 {offsets = [0, 0], sizes = [4, 96], strides = [1, 1]} : vector<4x128xf32> to vector<4x96xf32>
    %229 = arith.negf %228 : vector<4x96xf32>
    %230 = math.exp %229 : vector<4x96xf32>
    %cst_58 = arith.constant 1.000000e+00 : f32
    %231 = vector.broadcast %cst_58 : f32 to vector<4x96xf32>
    %232 = arith.addf %231, %230 : vector<4x96xf32>
    %233 = arith.divf %231, %232 : vector<4x96xf32>
    %234 = vector.extract_strided_slice %233 {offsets = [0, 0], sizes = [4, 32], strides = [1, 1]} : vector<4x96xf32> to vector<4x32xf32>
    %235 = vector.extract_strided_slice %233 {offsets = [0, 32], sizes = [4, 32], strides = [1, 1]} : vector<4x96xf32> to vector<4x32xf32>
    %236 = vector.extract_strided_slice %233 {offsets = [0, 64], sizes = [4, 32], strides = [1, 1]} : vector<4x96xf32> to vector<4x32xf32>
    %237 = vector.extract_strided_slice %227 {offsets = [0, 96], sizes = [4, 32], strides = [1, 1]} : vector<4x128xf32> to vector<4x32xf32>
    %238 = math.tanh %237 : vector<4x32xf32>
    %239 = arith.mulf %235, %201 : vector<4x32xf32>
    %240 = arith.mulf %234, %238 : vector<4x32xf32>
    %241 = arith.addf %239, %240 : vector<4x32xf32>
    %242 = math.tanh %241 : vector<4x32xf32>
    %243 = arith.mulf %236, %242 : vector<4x32xf32>
    %c5_i32 = arith.constant 5 : i32
    %244 = arith.index_cast %c5_i32 : i32 to index
    %c0_59 = arith.constant 0 : index
    %c0_60 = arith.constant 0 : index
    %245 = vector.load %arg9[%244, %c0_59, %c0_60] : memref<8x4x128xf32, #tpu.memory_space<vmem>>, vector<1x4x128xf32>
    %246 = vector.shape_cast %245 : vector<1x4x128xf32> to vector<4x128xf32>
    %cst_61 = arith.constant dense<0.000000e+00> : vector<4x128xf32>
    %247 = tpu.matmul %224, %1, %cst_61 {dimension_numbers = #tpu.dot_dimension_numbers<[1], [0], [0], [1], [0, 0, 1, 1], [], []>} : vector<4x32xf32>, vector<32x128xf32>, vector<4x128xf32> -> vector<4x128xf32>
    %248 = arith.addf %246, %247 : vector<4x128xf32>
    %249 = vector.extract_strided_slice %248 {offsets = [0, 0], sizes = [4, 96], strides = [1, 1]} : vector<4x128xf32> to vector<4x96xf32>
    %250 = arith.negf %249 : vector<4x96xf32>
    %251 = math.exp %250 : vector<4x96xf32>
    %cst_62 = arith.constant 1.000000e+00 : f32
    %252 = vector.broadcast %cst_62 : f32 to vector<4x96xf32>
    %253 = arith.addf %252, %251 : vector<4x96xf32>
    %254 = arith.divf %252, %253 : vector<4x96xf32>
    %255 = vector.extract_strided_slice %254 {offsets = [0, 0], sizes = [4, 32], strides = [1, 1]} : vector<4x96xf32> to vector<4x32xf32>
    %256 = vector.extract_strided_slice %254 {offsets = [0, 32], sizes = [4, 32], strides = [1, 1]} : vector<4x96xf32> to vector<4x32xf32>
    %257 = vector.extract_strided_slice %254 {offsets = [0, 64], sizes = [4, 32], strides = [1, 1]} : vector<4x96xf32> to vector<4x32xf32>
    %258 = vector.extract_strided_slice %248 {offsets = [0, 96], sizes = [4, 32], strides = [1, 1]} : vector<4x128xf32> to vector<4x32xf32>
    %259 = math.tanh %258 : vector<4x32xf32>
    %260 = arith.mulf %256, %222 : vector<4x32xf32>
    %261 = arith.mulf %255, %259 : vector<4x32xf32>
    %262 = arith.addf %260, %261 : vector<4x32xf32>
    %263 = math.tanh %262 : vector<4x32xf32>
    %264 = arith.mulf %257, %263 : vector<4x32xf32>
    %265 = tpu.concatenate %264, %243 in 1 : vector<4x32xf32>, vector<4x32xf32> -> vector<4x64xf32>
    %cst_63 = arith.constant dense<0.000000e+00> : vector<4x128xf32>
    %266 = tpu.matmul %265, %3, %cst_63 {dimension_numbers = #tpu.dot_dimension_numbers<[1], [0], [0], [1], [0, 0, 1, 1], [], []>} : vector<4x64xf32>, vector<64x128xf32>, vector<4x128xf32> -> vector<4x128xf32>
    %267 = arith.addf %266, %6 : vector<4x128xf32>
    %268 = vector.extract_strided_slice %267 {offsets = [0, 0], sizes = [4, 96], strides = [1, 1]} : vector<4x128xf32> to vector<4x96xf32>
    %269 = arith.negf %268 : vector<4x96xf32>
    %270 = math.exp %269 : vector<4x96xf32>
    %cst_64 = arith.constant 1.000000e+00 : f32
    %271 = vector.broadcast %cst_64 : f32 to vector<4x96xf32>
    %272 = arith.addf %271, %270 : vector<4x96xf32>
    %273 = arith.divf %271, %272 : vector<4x96xf32>
    %274 = vector.extract_strided_slice %273 {offsets = [0, 0], sizes = [4, 32], strides = [1, 1]} : vector<4x96xf32> to vector<4x32xf32>
    %275 = vector.extract_strided_slice %273 {offsets = [0, 32], sizes = [4, 32], strides = [1, 1]} : vector<4x96xf32> to vector<4x32xf32>
    %276 = vector.extract_strided_slice %273 {offsets = [0, 64], sizes = [4, 32], strides = [1, 1]} : vector<4x96xf32> to vector<4x32xf32>
    %277 = vector.extract_strided_slice %267 {offsets = [0, 96], sizes = [4, 32], strides = [1, 1]} : vector<4x128xf32> to vector<4x32xf32>
    %278 = math.tanh %277 : vector<4x32xf32>
    %279 = arith.mulf %275, %241 : vector<4x32xf32>
    %280 = arith.mulf %274, %278 : vector<4x32xf32>
    %281 = arith.addf %279, %280 : vector<4x32xf32>
    %282 = math.tanh %281 : vector<4x32xf32>
    %283 = arith.mulf %276, %282 : vector<4x32xf32>
    %c6_i32 = arith.constant 6 : i32
    %284 = arith.index_cast %c6_i32 : i32 to index
    %c0_65 = arith.constant 0 : index
    %c0_66 = arith.constant 0 : index
    %285 = vector.load %arg9[%284, %c0_65, %c0_66] : memref<8x4x128xf32, #tpu.memory_space<vmem>>, vector<1x4x128xf32>
    %286 = vector.shape_cast %285 : vector<1x4x128xf32> to vector<4x128xf32>
    %cst_67 = arith.constant dense<0.000000e+00> : vector<4x128xf32>
    %287 = tpu.matmul %264, %1, %cst_67 {dimension_numbers = #tpu.dot_dimension_numbers<[1], [0], [0], [1], [0, 0, 1, 1], [], []>} : vector<4x32xf32>, vector<32x128xf32>, vector<4x128xf32> -> vector<4x128xf32>
    %288 = arith.addf %286, %287 : vector<4x128xf32>
    %289 = vector.extract_strided_slice %288 {offsets = [0, 0], sizes = [4, 96], strides = [1, 1]} : vector<4x128xf32> to vector<4x96xf32>
    %290 = arith.negf %289 : vector<4x96xf32>
    %291 = math.exp %290 : vector<4x96xf32>
    %cst_68 = arith.constant 1.000000e+00 : f32
    %292 = vector.broadcast %cst_68 : f32 to vector<4x96xf32>
    %293 = arith.addf %292, %291 : vector<4x96xf32>
    %294 = arith.divf %292, %293 : vector<4x96xf32>
    %295 = vector.extract_strided_slice %294 {offsets = [0, 0], sizes = [4, 32], strides = [1, 1]} : vector<4x96xf32> to vector<4x32xf32>
    %296 = vector.extract_strided_slice %294 {offsets = [0, 32], sizes = [4, 32], strides = [1, 1]} : vector<4x96xf32> to vector<4x32xf32>
    %297 = vector.extract_strided_slice %294 {offsets = [0, 64], sizes = [4, 32], strides = [1, 1]} : vector<4x96xf32> to vector<4x32xf32>
    %298 = vector.extract_strided_slice %288 {offsets = [0, 96], sizes = [4, 32], strides = [1, 1]} : vector<4x128xf32> to vector<4x32xf32>
    %299 = math.tanh %298 : vector<4x32xf32>
    %300 = arith.mulf %296, %262 : vector<4x32xf32>
    %301 = arith.mulf %295, %299 : vector<4x32xf32>
    %302 = arith.addf %300, %301 : vector<4x32xf32>
    %303 = math.tanh %302 : vector<4x32xf32>
    %304 = arith.mulf %297, %303 : vector<4x32xf32>
    %305 = tpu.concatenate %304, %283 in 1 : vector<4x32xf32>, vector<4x32xf32> -> vector<4x64xf32>
    %cst_69 = arith.constant dense<0.000000e+00> : vector<4x128xf32>
    %306 = tpu.matmul %305, %3, %cst_69 {dimension_numbers = #tpu.dot_dimension_numbers<[1], [0], [0], [1], [0, 0, 1, 1], [], []>} : vector<4x64xf32>, vector<64x128xf32>, vector<4x128xf32> -> vector<4x128xf32>
    %307 = arith.addf %306, %6 : vector<4x128xf32>
    %308 = vector.extract_strided_slice %307 {offsets = [0, 0], sizes = [4, 96], strides = [1, 1]} : vector<4x128xf32> to vector<4x96xf32>
    %309 = arith.negf %308 : vector<4x96xf32>
    %310 = math.exp %309 : vector<4x96xf32>
    %cst_70 = arith.constant 1.000000e+00 : f32
    %311 = vector.broadcast %cst_70 : f32 to vector<4x96xf32>
    %312 = arith.addf %311, %310 : vector<4x96xf32>
    %313 = arith.divf %311, %312 : vector<4x96xf32>
    %314 = vector.extract_strided_slice %313 {offsets = [0, 0], sizes = [4, 32], strides = [1, 1]} : vector<4x96xf32> to vector<4x32xf32>
    %315 = vector.extract_strided_slice %313 {offsets = [0, 32], sizes = [4, 32], strides = [1, 1]} : vector<4x96xf32> to vector<4x32xf32>
    %316 = vector.extract_strided_slice %313 {offsets = [0, 64], sizes = [4, 32], strides = [1, 1]} : vector<4x96xf32> to vector<4x32xf32>
    %317 = vector.extract_strided_slice %307 {offsets = [0, 96], sizes = [4, 32], strides = [1, 1]} : vector<4x128xf32> to vector<4x32xf32>
    %318 = math.tanh %317 : vector<4x32xf32>
    %319 = arith.mulf %315, %281 : vector<4x32xf32>
    %320 = arith.mulf %314, %318 : vector<4x32xf32>
    %321 = arith.addf %319, %320 : vector<4x32xf32>
    %322 = math.tanh %321 : vector<4x32xf32>
    %323 = arith.mulf %316, %322 : vector<4x32xf32>
    %c7_i32 = arith.constant 7 : i32
    %324 = arith.index_cast %c7_i32 : i32 to index
    %c0_71 = arith.constant 0 : index
    %c0_72 = arith.constant 0 : index
    %325 = vector.load %arg9[%324, %c0_71, %c0_72] : memref<8x4x128xf32, #tpu.memory_space<vmem>>, vector<1x4x128xf32>
    %326 = vector.shape_cast %325 : vector<1x4x128xf32> to vector<4x128xf32>
    %cst_73 = arith.constant dense<0.000000e+00> : vector<4x128xf32>
    %327 = tpu.matmul %304, %1, %cst_73 {dimension_numbers = #tpu.dot_dimension_numbers<[1], [0], [0], [1], [0, 0, 1, 1], [], []>} : vector<4x32xf32>, vector<32x128xf32>, vector<4x128xf32> -> vector<4x128xf32>
    %328 = arith.addf %326, %327 : vector<4x128xf32>
    %329 = vector.extract_strided_slice %328 {offsets = [0, 0], sizes = [4, 96], strides = [1, 1]} : vector<4x128xf32> to vector<4x96xf32>
    %330 = arith.negf %329 : vector<4x96xf32>
    %331 = math.exp %330 : vector<4x96xf32>
    %cst_74 = arith.constant 1.000000e+00 : f32
    %332 = vector.broadcast %cst_74 : f32 to vector<4x96xf32>
    %333 = arith.addf %332, %331 : vector<4x96xf32>
    %334 = arith.divf %332, %333 : vector<4x96xf32>
    %335 = vector.extract_strided_slice %334 {offsets = [0, 0], sizes = [4, 32], strides = [1, 1]} : vector<4x96xf32> to vector<4x32xf32>
    %336 = vector.extract_strided_slice %334 {offsets = [0, 32], sizes = [4, 32], strides = [1, 1]} : vector<4x96xf32> to vector<4x32xf32>
    %337 = vector.extract_strided_slice %334 {offsets = [0, 64], sizes = [4, 32], strides = [1, 1]} : vector<4x96xf32> to vector<4x32xf32>
    %338 = vector.extract_strided_slice %328 {offsets = [0, 96], sizes = [4, 32], strides = [1, 1]} : vector<4x128xf32> to vector<4x32xf32>
    %339 = math.tanh %338 : vector<4x32xf32>
    %340 = arith.mulf %336, %302 : vector<4x32xf32>
    %341 = arith.mulf %335, %339 : vector<4x32xf32>
    %342 = arith.addf %340, %341 : vector<4x32xf32>
    %343 = math.tanh %342 : vector<4x32xf32>
    %344 = arith.mulf %337, %343 : vector<4x32xf32>
    %345 = tpu.concatenate %344, %323 in 1 : vector<4x32xf32>, vector<4x32xf32> -> vector<4x64xf32>
    %cst_75 = arith.constant dense<0.000000e+00> : vector<4x128xf32>
    %346 = tpu.matmul %345, %3, %cst_75 {dimension_numbers = #tpu.dot_dimension_numbers<[1], [0], [0], [1], [0, 0, 1, 1], [], []>} : vector<4x64xf32>, vector<64x128xf32>, vector<4x128xf32> -> vector<4x128xf32>
    %347 = arith.addf %346, %6 : vector<4x128xf32>
    %348 = vector.extract_strided_slice %347 {offsets = [0, 0], sizes = [4, 96], strides = [1, 1]} : vector<4x128xf32> to vector<4x96xf32>
    %349 = arith.negf %348 : vector<4x96xf32>
    %350 = math.exp %349 : vector<4x96xf32>
    %cst_76 = arith.constant 1.000000e+00 : f32
    %351 = vector.broadcast %cst_76 : f32 to vector<4x96xf32>
    %352 = arith.addf %351, %350 : vector<4x96xf32>
    %353 = arith.divf %351, %352 : vector<4x96xf32>
    %354 = vector.extract_strided_slice %353 {offsets = [0, 0], sizes = [4, 32], strides = [1, 1]} : vector<4x96xf32> to vector<4x32xf32>
    %355 = vector.extract_strided_slice %353 {offsets = [0, 32], sizes = [4, 32], strides = [1, 1]} : vector<4x96xf32> to vector<4x32xf32>
    %356 = vector.extract_strided_slice %353 {offsets = [0, 64], sizes = [4, 32], strides = [1, 1]} : vector<4x96xf32> to vector<4x32xf32>
    %357 = vector.extract_strided_slice %347 {offsets = [0, 96], sizes = [4, 32], strides = [1, 1]} : vector<4x128xf32> to vector<4x32xf32>
    %358 = math.tanh %357 : vector<4x32xf32>
    %359 = arith.mulf %355, %321 : vector<4x32xf32>
    %360 = arith.mulf %354, %358 : vector<4x32xf32>
    %361 = arith.addf %359, %360 : vector<4x32xf32>
    %362 = math.tanh %361 : vector<4x32xf32>
    %363 = arith.mulf %356, %362 : vector<4x32xf32>
    %c8_i32 = arith.constant 8 : i32
    %c0_77 = arith.constant 0 : index
    %c0_78 = arith.constant 0 : index
    %364 = vector.load %arg6[%c0_77, %c0_78] : memref<1x32xf32, #tpu.memory_space<vmem>>, vector<1x32xf32>
    %365 = vector.broadcast %364 : vector<1x32xf32> to vector<4x32xf32>
    %366 = arith.mulf %363, %365 : vector<4x32xf32>
    %cst_79 = arith.constant dense<0.000000e+00> : vector<4xf32>
    %367 = vector.multi_reduction <add>, %366, %cst_79 [1] : vector<4x32xf32> to vector<4xf32>
    %368 = vector.shape_cast %367 : vector<4xf32> to vector<4x1xf32>
    %c0_80 = arith.constant 0 : index
    %c0_81 = arith.constant 0 : index
    %369 = vector.load %arg7[%c0_80, %c0_81] : memref<1x1xf32, #tpu.memory_space<vmem>>, vector<1x1xf32>
    %370 = vector.broadcast %369 : vector<1x1xf32> to vector<4x1xf32>
    %371 = arith.addf %368, %370 : vector<4x1xf32>
    %c0_82 = arith.constant 0 : index
    %c0_83 = arith.constant 0 : index
    %372 = vector.load %arg8[%c0_82, %c0_83] : memref<4x1xf32, #tpu.memory_space<vmem>>, vector<4x1xf32>
    tpu.vector_store %arg8[%c0_82, %c0_83], %371 {strides = array<i32>} : memref<4x1xf32, #tpu.memory_space<vmem>>, vector<4x1xf32>,
    return
  }
}

</mosaic_0001>

<bundles_post_ra>
// kernel: _lambda_.1
= control target key start
LH: loop header
LB: loop body
LE: loop exit
PB: predicated region body
PF: predicated region fallthrough
CT: control target
= control target key end

     0   :  { %vm62_vm0 = vcmask 64512   ;;  %v2520_v3 = vmov 0.0|0.0   ;;  %vm2521_vm1 = vmmov 0   ;;  %v2522_v4 = vmov 0.0   ;;  %s2523_s22 = smov 32   ;;  %s2524_s15 = smov 64   ;;  %s2924_s1 = inlined_call_operand.vmem [shape: f32[8,128], index: 1, kind: input, shape index: {}]   ;;  %s2925_s0 = inlined_call_operand.vmem [shape: f32[32,8], index: 0, kind: input, shape index: {}]   ;;  %s2926_s2 = inlined_call_operand.vmem [shape: f32[32,128], index: 2, kind: input, shape index: {}]   ;;  %s2927_s3 = inlined_call_operand.vmem [shape: f32[1,128], index: 3, kind: input, shape index: {}]   ;;  %s2928_s4 = inlined_call_operand.vmem [shape: f32[64,128], index: 4, kind: input, shape index: {}]   ;;  %s2929_s5 = inlined_call_operand.vmem [shape: f32[1,128], index: 5, kind: input, shape index: {}]   ;;  %s2930_s6 = inlined_call_operand.vmem [shape: f32[1,32], index: 6, kind: input, shape index: {}]   ;;  %s2931_s7 = inlined_call_operand.<no memory space> [shape: f32[1,1], index: 7, kind: input, shape index: {}]   ;;  %s2932_s8 = inlined_call_operand.vmem [shape: f32[4,1], index: 8, kind: output, shape index: {}]  }
   0x1   :  { %v31_v0 = vld [vmem:[%s2924_s1] sm:$0xff]  ;;  %v53_v2 = vld [vmem:[%s2925_s0 + $0x8] sm:$0xff]  ;;  %2260 = vmatprep.subr.bf16.mxu1 %v2520_v3  ;;  %2040 = vmatprep.mubr.msk.f32.mxu1 %vm2521_vm1, %v2522_v4  ;;  %v54_v7 = vld [vmem:[%s2925_s0 + $0x10] sm:$0xff]  ;;  %vm176_vm2 = vcmask 261120   ;;  %vm280_vm3 = vcmask 523264   ;;  %vm1820_vm4 = vcmask 257024  }
   0x2   :  { %v52_v1 = vld [vmem:[%s2925_s0] sm:$0xff]  ;;  %1994 = vmatprep.subr.mxu0 %v31_v0  ;;  %v33_v6 = vld [vmem:[%s2926_s2 + $0x8] sm:$0xff]  ;;  %v34_v9 = vld [vmem:[%s2926_s2 + $0x10] sm:$0xff]  ;;  %vm1832_vm5 = vcmask 3072  }
   0x3   :  { %1996 = vmatprep.mubr.msk.f32.mxu0 %vm62_vm0, %v52_v1  ;;  %v32_v5 = vld [vmem:[%s2926_s2] sm:$0xff]  ;;  %1995 = vmatpush3.msra.mxu0 %v31_v0  ;;  %v35_v10 = vld [vmem:[%s2926_s2 + $0x18] sm:$0xff]  ;;  %v38_v37 = vld [vmem:[%s2928_s4 + $0x8] sm:$0xff] }
   0x4   :  { %v2593_v8 = vpack.c.bf16 %v33_v6, %v32_v5  ;;  %1997 = vmatmul.mubr.msk.f32.vlgmr.msra.gmra.mrb[0].mxu0 %vm62_vm0, %v53_v2  ;;  %2242 = vmatprep.subr.bf16.mxu0 %v2520_v3  ;;  %v55_v11 = vld [vmem:[%s2925_s0 + $0x18] sm:$0xff]  ;;  %v2608_v12 = vpack.c.bf16 %v35_v10, %v34_v9  ;;  %v1839_v13 = vld [vmem:[%s2927_s3] ss:$0 sm:$0xff]  ;;  %v39_v38 = vld [vmem:[%s2928_s4 + $0x10] sm:$0xff] }
   0x5   :  { %1999 = vmatprep.mubr.msk.f32.mxu0 %vm62_vm0, %v54_v7  ;;  %v37_v36 = vld [vmem:[%s2928_s4] sm:$0xff]  ;;  %v40_v40 = vld [vmem:[%s2928_s4 + $0x18] sm:$0xff]  ;;  %v42_v43 = vld [vmem:[%s2928_s4 + $0x28] sm:$0xff] }
   0x6   :  { %2244 = vmatpush3.bf16.msra.mxu0 %v2593_v8  ;;  %2262 = vmatpush3.bf16.msra.mxu1 %v2593_v8  ;;  %v2640_v39 = vpack.c.bf16 %v38_v37, %v37_v36  ;;  %v2646_v41 = vpack.c.bf16 %v40_v40, %v39_v38  ;;  %v41_v42 = vld [vmem:[%s2928_s4 + $0x20] sm:$0xff]  ;;  %v43_v45 = vld [vmem:[%s2928_s4 + $0x30] sm:$0xff]  ;;  %v44_v46 = vld [vmem:[%s2928_s4 + $0x38] sm:$0xff] }
   0x7   :  { %2245 = vmatprep.subr.bf16.mxu0 %v2520_v3  ;;  %2263 = vmatprep.subr.bf16.mxu1 %v2520_v3  ;;  %v2656_v44 = vpack.c.bf16 %v42_v43, %v41_v42  ;;  %v2667_v48 = vpack.c.bf16 %v44_v46, %v43_v45  ;;  %v2695_v53 = vld [vmem:[%s2929_s5] ss:$0 sm:$0xff]  ;;  %s2525_s5 = smov 96  }
   0x8   :  { %2000 = vmatmul.mubr.msk.f32.gmra.mrb[2].mxu0 %vm62_vm0, %v55_v11 }
   0x9   :  { %2010 = vmatprep.mubr.msk.f32.mxu0 %vm2521_vm1, %v2522_v4 }
   0xa   :  { %2247 = vmatpush3.bf16.msra.mxu0 %v2608_v12  ;;  %2265 = vmatpush3.bf16.msra.mxu1 %v2608_v12 }
   0xb   :  { %2248 = vmatprep.subr.bf16.mxu0 %v2520_v3  ;;  %2266 = vmatprep.subr.bf16.mxu1 %v2520_v3 }
   0xd   :  { %2011 = vmatmul.mubr.f32.vlgmr.msra.gmra.mrb[4].mxu0 %v2522_v4 }
   0xe   :  { %2029 = vmatprep.mubr.msk.f32.mxu0 %vm2521_vm1, %v2522_v4  ;;  %2250 = vmatpush3.bf16.msra.mxu0 %v2640_v39 }
   0xf   :  { %2251 = vmatprep.subr.bf16.mxu0 %v2520_v3 }
  0x12   :  { %2253 = vmatpush3.bf16.msra.mxu0 %v2646_v41 }
  0x13   :  { %2254 = vmatprep.subr.bf16.mxu0 %v2520_v3 }
  0x16   :  { %2256 = vmatpush3.bf16.msra.mxu0 %v2656_v44 }
  0x17   :  { %2257 = vmatprep.subr.bf16.mxu0 %v2520_v3 }
  0x1a   :  { %2259 = vmatpush3.bf16.msra.mxu0 %v2667_v48 }
  0x1b   :  { %2278 = vmatprep.subr.bf16.mxu0 %v2520_v3 }
  0xd7   :  { %v1998_v14 = vpop.f32.mrb[0].mxu0 }
  0xd8   :  { %v147_v15 = vadd.f32 %v1998_v14, %v1839_v13  ;;  %v141_v16 = vpop.f32.mrb[1].mxu0 }
  0xd9   :  { %v142_v17 = vadd.f32 %v1839_v13, %v141_v16 }
  0xda   :  { %164 = vst [vmem:[#allocation2 + $0x8] sm:$0xff] %v147_v15  }
  0xdb   :  { %160 = vst [vmem:[#allocation2] sm:$0xff] %v142_v17   ;;  %v2001_v18 = vpop.f32.mrb[2].mxu0 }
  0xdc   :  { %v157_v19 = vadd.f32 %v2001_v18, %v1839_v13  ;;  %v151_v20 = vpop.f32.mrb[3].mxu0 }
  0xdd   :  { %v152_v21 = vadd.f32 %v1839_v13, %v151_v20 }
  0xde   :  { %172 = vst [vmem:[#allocation2 + $0x18] sm:$0xff] %v157_v19  }
  0xdf   :  { %168 = vst [vmem:[#allocation2 + $0x10] sm:$0xff] %v152_v21  }
  0xe0   :  { %v246_v22 = vpop.f32.mrb[4].mxu0 }
  0xe1   :  { %v2012_v23 = vpop.f32.mrb[5].mxu0 }
  0xe2   :  { %v175_v24 = vld [vmem:[#allocation2] sm:$0xf]  ;;  %v378_v54 = vld [vmem:[#allocation2 + $0x4] sm:$0xf] }
  0xe3   :  { %v250_v25 = vadd.f32 %v246_v22, %v175_v24 }
  0xe5   :  { %2392 = vtanh.f32 %v250_v25  ;;  %v1844_v27 = vmul.f32 -1.442695, %v250_v25 }
  0xe7   :  { %2394 = vpow2.f32 %v1844_v27 }
  0xef   :  { %v2393_v26 = vpop.eup %2392 }
  0xf0   :  { %260 = vrot.lane.b32.xlu0 %v2393_v26, %s2523_s22 }
  0xf1   :  { %v2395_v28 = vpop.eup %2394 }
  0xf2   :  { %v254_v29 = vadd.f32 1.0, %v2395_v28 }
  0xf4   :  { %2396 = vrcp.f32 %v254_v29 }
  0xfe   :  { %v2397_v30 = vpop.eup %2396 }
  0xff   :  { %v258_v33 = vmul.f32 0.0, %v2397_v30 }
 0x162   :  { %v261_v31 = vpop.permute.xlu0 %260 }
 0x163   :  { %v263_v32 = vmul.f32 %v2397_v30, %v261_v31 }
 0x165   :  { %265 = vrot.lane.b32.xlu0 %v263_v32, %s2523_s22 }
 0x1d7   :  { %v266_v34 = vpop.permute.xlu0 %265 }
 0x1d8   :  { %v2628_v35 = vadd.f32 %v266_v34, %v258_v33 }
 0x1da   :  { %2398 = vtanh.f32 %v2628_v35 }
 0x1e4   :  { %v2399_v47 = vpop.eup %2398 }
 0x1e5   :  { %271 = vrot.lane.b32.xlu1 %v2399_v47, %s2523_s22 }
 0x257   :  { %v272_v49 = vpop.permute.xlu1 %271 }
 0x258   :  { %v274_v50 = vmul.f32 %v2397_v30, %v272_v49  ;;  %v582_v30 = vld [vmem:[#allocation2 + $0x8] sm:$0xf] }
 0x25a   :  { %276 = vrot.lane.b32.xlu1 %v274_v50, %s2524_s15 }
 0x2cc   :  { %v277_v51 = vpop.permute.xlu1 %276 }
 0x2cd   :  { %v279_v52 = vsel %vm176_vm2, %v277_v51, 0.0  ;;  %2041 = vmatmul.mubr.msk.f32.vlgmr.msra.gmra.mrb[0].mxu1 %vm176_vm2, %v277_v51 }
 0x2ce   :  { %2030 = vmatmul.mubr.msk.f32.vlgmr.msra.gmra.mrb[6].mxu0 %vm280_vm3, %v279_v52  ;;  %2268 = vmatpush3.bf16.msra.mxu1 %v2640_v39 }
 0x2cf   :  { %2269 = vmatprep.subr.bf16.mxu1 %v2520_v3  ;;  %2280 = vmatpush3.bf16.msra.mxu0 %v2593_v8 }
 0x2d0   :  { %2281 = vmatprep.subr.bf16.mxu0 %v2520_v3  ;;  %2070 = vmatprep.mubr.msk.f32.mxu0 %vm2521_vm1, %v2522_v4 }
 0x2d1   :  { %2059 = vmatprep.mubr.msk.f32.mxu1 %vm2521_vm1, %v2522_v4 }
 0x2d2   :  { %2271 = vmatpush3.bf16.msra.mxu1 %v2646_v41 }
 0x2d3   :  { %2272 = vmatprep.subr.bf16.mxu1 %v2520_v3  ;;  %2283 = vmatpush3.bf16.msra.mxu0 %v2608_v12 }
 0x2d4   :  { %2284 = vmatprep.subr.bf16.mxu0 %v2520_v3 }
 0x2d6   :  { %2274 = vmatpush3.bf16.msra.mxu1 %v2656_v44 }
 0x2d7   :  { %2275 = vmatprep.subr.bf16.mxu1 %v2520_v3 }
 0x2da   :  { %2277 = vmatpush3.bf16.msra.mxu1 %v2667_v48 }
 0x2db   :  { %2296 = vmatprep.subr.bf16.mxu1 %v2520_v3 }
 0x3a0   :  { %v447_v55 = vpop.f32.mrb[0].mxu1 }
 0x3a1   :  { %v451_v56 = vadd.f32 %v447_v55, %v378_v54  ;;  %v350_v57 = vpop.f32.mrb[6].mxu0  ;;  %v2042_v58 = vpop.f32.mrb[1].mxu1 }
 0x3a2   :  { %v351_v59 = vadd.f32 %v2695_v53, %v350_v57  ;;  %v2031_v60 = vpop.f32.mrb[7].mxu0 }
 0x3a3   :  { %2400 = vtanh.f32 %v451_v56  ;;  %v1848_v63 = vmul.f32 -1.442695, %v451_v56 }
 0x3a4   :  { %2402 = vtanh.f32 %v351_v59  ;;  %v1846_v0 = vmul.f32 -1.442695, %v351_v59 }
 0x3a5   :  { %2404 = vpow2.f32 %v1848_v63 }
 0x3a6   :  { %2406 = vpow2.f32 %v1846_v0 }
 0x3ad   :  { %v2401_v61 = vpop.eup %2400 }
 0x3ae   :  { %v2403_v62 = vpop.eup %2402  ;;  %461 = vrot.lane.b32.xlu1 %v2401_v61, %s2523_s22 }
 0x3af   :  { %363 = vrot.lane.b32.xlu0 %v2403_v62, %s2523_s22  ;;  %v2405_v1 = vpop.eup %2404 }
 0x3b0   :  { %v2407_v2 = vpop.eup %2406  ;;  %v455_v5 = vadd.f32 1.0, %v2405_v1 }
 0x3b1   :  { %v357_v6 = vadd.f32 1.0, %v2407_v2 }
 0x3b2   :  { %2408 = vrcp.f32 %v455_v5 }
 0x3b3   :  { %2410 = vrcp.f32 %v357_v6 }
 0x3bc   :  { %v2409_v7 = vpop.eup %2408 }
 0x3bd   :  { %v2411_v10 = vpop.eup %2410  ;;  %v459_v15 = vmul.f32 %v2409_v7, %v2628_v35 }
 0x3be   :  { %v361_v17 = vmul.f32 0.0, %v2411_v10 }
 0x420   :  { %v462_v9 = vpop.permute.xlu1 %461 }
 0x421   :  { %v464_v11 = vmul.f32 %v2409_v7, %v462_v9  ;;  %v364_v13 = vpop.permute.xlu0 %363 }
 0x422   :  { %v366_v14 = vmul.f32 %v2411_v10, %v364_v13 }
 0x423   :  { %466 = vrot.lane.b32.xlu1 %v464_v11, %s2523_s22 }
 0x424   :  { %368 = vrot.lane.b32.xlu0 %v366_v14, %s2523_s22 }
 0x495   :  { %v467_v16 = vpop.permute.xlu1 %466 }
 0x496   :  { %v2703_v18 = vadd.f32 %v467_v16, %v459_v15  ;;  %v369_v19 = vpop.permute.xlu0 %368 }
 0x497   :  { %v2705_v20 = vadd.f32 %v369_v19, %v361_v17 }
 0x498   :  { %2412 = vtanh.f32 %v2703_v18 }
 0x499   :  { %2414 = vtanh.f32 %v2705_v20 }
 0x4a2   :  { %v2413_v21 = vpop.eup %2412 }
 0x4a3   :  { %v2415_v22 = vpop.eup %2414  ;;  %472 = vrot.lane.b32.xlu1 %v2413_v21, %s2523_s22 }
 0x4a4   :  { %374 = vrot.lane.b32.xlu0 %v2415_v22, %s2523_s22 }
 0x515   :  { %v473_v23 = vpop.permute.xlu1 %472 }
 0x516   :  { %v475_v24 = vmul.f32 %v2409_v7, %v473_v23  ;;  %v375_v25 = vpop.permute.xlu0 %374 }
 0x517   :  { %v377_v26 = vmul.f32 %v2411_v10, %v375_v25  ;;  %v786_v10 = vld [vmem:[#allocation2 + $0xc] sm:$0xf] }
 0x518   :  { %477 = vrot.lane.b32.xlu0 %v475_v24, %s2524_s15 }
 0x519   :  { %481 = vrot.lane.b32.xlu1 %v377_v26, %s2525_s5 }
 0x58a   :  { %v478_v27 = vpop.permute.xlu0 %477 }
 0x58b   :  { %v482_v28 = vpop.permute.xlu1 %481  ;;  %2071 = vmatmul.mubr.msk.f32.vlgmr.msra.gmra.mrb[8].mxu0 %vm176_vm2, %v478_v27 }
 0x58c   :  { %v484_v29 = vsel %vm176_vm2, %v478_v27, %v482_v28  ;;  %2286 = vmatpush3.bf16.msra.mxu0 %v2640_v39  ;;  %2089 = vmatprep.mubr.msk.f32.mxu0 %vm2521_vm1, %v2522_v4 }
 0x58d   :  { %2060 = vmatmul.mubr.msk.f32.vlgmr.msra.gmra.mrb[2].mxu1 %vm280_vm3, %v484_v29  ;;  %2287 = vmatprep.subr.bf16.mxu0 %v2520_v3 }
 0x58e   :  { %2298 = vmatpush3.bf16.msra.mxu1 %v2593_v8  ;;  %2100 = vmatprep.mubr.msk.f32.mxu1 %vm2521_vm1, %v2522_v4 }
 0x58f   :  { %2299 = vmatprep.subr.bf16.mxu1 %v2520_v3 }
 0x590   :  { %2289 = vmatpush3.bf16.msra.mxu0 %v2646_v41 }
 0x591   :  { %2290 = vmatprep.subr.bf16.mxu0 %v2520_v3 }
 0x592   :  { %2301 = vmatpush3.bf16.msra.mxu1 %v2608_v12 }
 0x593   :  { %2302 = vmatprep.subr.bf16.mxu1 %v2520_v3 }
 0x594   :  { %2292 = vmatpush3.bf16.msra.mxu0 %v2656_v44 }
 0x595   :  { %2293 = vmatprep.subr.bf16.mxu0 %v2520_v3 }
 0x598   :  { %2295 = vmatpush3.bf16.msra.mxu0 %v2667_v48 }
 0x599   :  { %2314 = vmatprep.subr.bf16.mxu0 %v2520_v3 }
 0x65e   :  { %v651_v31 = vpop.f32.mrb[8].mxu0 }
 0x65f   :  { %v655_v32 = vadd.f32 %v651_v31, %v582_v30  ;;  %v2072_v33 = vpop.f32.mrb[9].mxu0 }
 0x660   :  { %v554_v34 = vpop.f32.mrb[2].mxu1 }
 0x661   :  { %2416 = vtanh.f32 %v655_v32  ;;  %v555_v35 = vadd.f32 %v2695_v53, %v554_v34  ;;  %v2061_v36 = vpop.f32.mrb[3].mxu1  ;;  %v1852_v40 = vmul.f32 -1.442695, %v655_v32 }
 0x663   :  { %2418 = vtanh.f32 %v555_v35  ;;  %v1850_v42 = vmul.f32 -1.442695, %v555_v35 }
 0x664   :  { %2420 = vpow2.f32 %v1852_v40 }
 0x665   :  { %2422 = vpow2.f32 %v1850_v42 }
 0x66b   :  { %v2417_v37 = vpop.eup %2416 }
 0x66c   :  { %665 = vrot.lane.b32.xlu1 %v2417_v37, %s2523_s22 }
 0x66d   :  { %v2419_v38 = vpop.eup %2418 }
 0x66e   :  { %567 = vrot.lane.b32.xlu0 %v2419_v38, %s2523_s22  ;;  %v2421_v43 = vpop.eup %2420 }
 0x66f   :  { %v2423_v45 = vpop.eup %2422  ;;  %v659_v46 = vadd.f32 1.0, %v2421_v43 }
 0x670   :  { %v561_v47 = vadd.f32 1.0, %v2423_v45 }
 0x671   :  { %2424 = vrcp.f32 %v659_v46 }
 0x672   :  { %2426 = vrcp.f32 %v561_v47 }
 0x67b   :  { %v2425_v49 = vpop.eup %2424 }
 0x67c   :  { %v2427_v52 = vpop.eup %2426  ;;  %v663_v56 = vmul.f32 %v2425_v49, %v2703_v18 }
 0x67d   :  { %v565_v59 = vmul.f32 %v2427_v52, %v2705_v20 }
 0x6de   :  { %v666_v50 = vpop.permute.xlu1 %665 }
 0x6df   :  { %v668_v51 = vmul.f32 %v2425_v49, %v666_v50 }
 0x6e0   :  { %v568_v54 = vpop.permute.xlu0 %567 }
 0x6e1   :  { %670 = vrot.lane.b32.xlu1 %v668_v51, %s2523_s22  ;;  %v570_v55 = vmul.f32 %v2427_v52, %v568_v54  ;;  %v990_v51 = vld [vmem:[#allocation2 + $0x10] sm:$0xf] }
 0x6e3   :  { %572 = vrot.lane.b32.xlu0 %v570_v55, %s2523_s22 }
 0x753   :  { %v671_v57 = vpop.permute.xlu1 %670 }
 0x754   :  { %v2738_v58 = vadd.f32 %v671_v57, %v663_v56 }
 0x755   :  { %v573_v60 = vpop.permute.xlu0 %572 }
 0x756   :  { %2428 = vtanh.f32 %v2738_v58  ;;  %v2742_v61 = vadd.f32 %v573_v60, %v565_v59 }
 0x758   :  { %2430 = vtanh.f32 %v2742_v61 }
 0x760   :  { %v2429_v62 = vpop.eup %2428 }
 0x761   :  { %676 = vrot.lane.b32.xlu1 %v2429_v62, %s2523_s22 }
 0x762   :  { %v2431_v63 = vpop.eup %2430 }
 0x763   :  { %578 = vrot.lane.b32.xlu0 %v2431_v63, %s2523_s22 }
 0x7d3   :  { %v677_v0 = vpop.permute.xlu1 %676 }
 0x7d4   :  { %v679_v1 = vmul.f32 %v2425_v49, %v677_v0 }
 0x7d5   :  { %v579_v2 = vpop.permute.xlu0 %578 }
 0x7d6   :  { %681 = vrot.lane.b32.xlu0 %v679_v1, %s2524_s15  ;;  %v581_v5 = vmul.f32 %v2427_v52, %v579_v2 }
 0x7d8   :  { %685 = vrot.lane.b32.xlu1 %v581_v5, %s2525_s5 }
 0x848   :  { %v682_v6 = vpop.permute.xlu0 %681 }
 0x849   :  { %2101 = vmatmul.mubr.msk.f32.vlgmr.msra.gmra.mrb[4].mxu1 %vm176_vm2, %v682_v6 }
 0x84a   :  { %2304 = vmatpush3.bf16.msra.mxu1 %v2640_v39  ;;  %2119 = vmatprep.mubr.msk.f32.mxu1 %vm2521_vm1, %v2522_v4  ;;  %v686_v7 = vpop.permute.xlu1 %685 }
 0x84b   :  { %2305 = vmatprep.subr.bf16.mxu1 %v2520_v3  ;;  %v688_v9 = vsel %vm176_vm2, %v682_v6, %v686_v7 }
 0x84c   :  { %2090 = vmatmul.mubr.msk.f32.vlgmr.msra.gmra.mrb[10].mxu0 %vm280_vm3, %v688_v9 }
 0x84d   :  { %2316 = vmatpush3.bf16.msra.mxu0 %v2593_v8  ;;  %2130 = vmatprep.mubr.msk.f32.mxu0 %vm2521_vm1, %v2522_v4 }
 0x84e   :  { %2307 = vmatpush3.bf16.msra.mxu1 %v2646_v41  ;;  %2317 = vmatprep.subr.bf16.mxu0 %v2520_v3 }
 0x84f   :  { %2308 = vmatprep.subr.bf16.mxu1 %v2520_v3 }
 0x851   :  { %2319 = vmatpush3.bf16.msra.mxu0 %v2608_v12 }
 0x852   :  { %2310 = vmatpush3.bf16.msra.mxu1 %v2656_v44  ;;  %2320 = vmatprep.subr.bf16.mxu0 %v2520_v3 }
 0x853   :  { %2311 = vmatprep.subr.bf16.mxu1 %v2520_v3 }
 0x856   :  { %2313 = vmatpush3.bf16.msra.mxu1 %v2667_v48 }
 0x857   :  { %2332 = vmatprep.subr.bf16.mxu1 %v2520_v3 }
 0x91c   :  { %v855_v11 = vpop.f32.mrb[4].mxu1 }
 0x91d   :  { %v859_v13 = vadd.f32 %v855_v11, %v786_v10  ;;  %v2102_v14 = vpop.f32.mrb[5].mxu1 }
 0x91f   :  { %2432 = vtanh.f32 %v859_v13  ;;  %v758_v15 = vpop.f32.mrb[10].mxu0  ;;  %v1856_v20 = vmul.f32 -1.442695, %v859_v13 }
 0x920   :  { %v759_v16 = vadd.f32 %v2695_v53, %v758_v15  ;;  %v2091_v17 = vpop.f32.mrb[11].mxu0 }
 0x922   :  { %2434 = vtanh.f32 %v759_v16  ;;  %v1854_v21 = vmul.f32 -1.442695, %v759_v16 }
 0x923   :  { %2436 = vpow2.f32 %v1856_v20 }
 0x924   :  { %2438 = vpow2.f32 %v1854_v21 }
 0x929   :  { %v2433_v18 = vpop.eup %2432 }
 0x92a   :  { %869 = vrot.lane.b32.xlu1 %v2433_v18, %s2523_s22 }
 0x92c   :  { %v2435_v19 = vpop.eup %2434 }
 0x92d   :  { %771 = vrot.lane.b32.xlu0 %v2435_v19, %s2523_s22  ;;  %v2437_v22 = vpop.eup %2436 }
 0x92e   :  { %v863_v23 = vadd.f32 1.0, %v2437_v22  ;;  %v2439_v24 = vpop.eup %2438 }
 0x92f   :  { %v765_v25 = vadd.f32 1.0, %v2439_v24 }
 0x930   :  { %2440 = vrcp.f32 %v863_v23 }
 0x931   :  { %2442 = vrcp.f32 %v765_v25 }
 0x93a   :  { %v2441_v26 = vpop.eup %2440 }
 0x93b   :  { %v2443_v29 = vpop.eup %2442  ;;  %v867_v32 = vmul.f32 %v2441_v26, %v2738_v58 }
 0x93c   :  { %v769_v35 = vmul.f32 %v2443_v29, %v2742_v61 }
 0x99c   :  { %v870_v27 = vpop.permute.xlu1 %869 }
 0x99d   :  { %v872_v28 = vmul.f32 %v2441_v26, %v870_v27 }
 0x99f   :  { %874 = vrot.lane.b32.xlu1 %v872_v28, %s2523_s22  ;;  %v772_v30 = vpop.permute.xlu0 %771  ;;  %v1194_v28 = vld [vmem:[#allocation2 + $0x14] sm:$0xf] }
 0x9a0   :  { %v774_v31 = vmul.f32 %v2443_v29, %v772_v30 }
 0x9a2   :  { %776 = vrot.lane.b32.xlu0 %v774_v31, %s2523_s22 }
 0xa11   :  { %v875_v33 = vpop.permute.xlu1 %874 }
 0xa12   :  { %v2774_v34 = vadd.f32 %v875_v33, %v867_v32 }
 0xa14   :  { %2444 = vtanh.f32 %v2774_v34  ;;  %v777_v36 = vpop.permute.xlu0 %776 }
 0xa15   :  { %v2778_v37 = vadd.f32 %v777_v36, %v769_v35 }
 0xa17   :  { %2446 = vtanh.f32 %v2778_v37 }
 0xa1e   :  { %v2445_v38 = vpop.eup %2444 }
 0xa1f   :  { %880 = vrot.lane.b32.xlu1 %v2445_v38, %s2523_s22 }
 0xa21   :  { %v2447_v40 = vpop.eup %2446 }
 0xa22   :  { %782 = vrot.lane.b32.xlu0 %v2447_v40, %s2523_s22 }
 0xa91   :  { %v881_v42 = vpop.permute.xlu1 %880 }
 0xa92   :  { %v883_v43 = vmul.f32 %v2441_v26, %v881_v42 }
 0xa94   :  { %885 = vrot.lane.b32.xlu0 %v883_v43, %s2524_s15  ;;  %v783_v45 = vpop.permute.xlu0 %782 }
 0xa95   :  { %v785_v46 = vmul.f32 %v2443_v29, %v783_v45 }
 0xa97   :  { %889 = vrot.lane.b32.xlu1 %v785_v46, %s2525_s5 }
 0xb06   :  { %v886_v47 = vpop.permute.xlu0 %885 }
 0xb07   :  { %2131 = vmatmul.mubr.msk.f32.vlgmr.msra.gmra.mrb[12].mxu0 %vm176_vm2, %v886_v47 }
 0xb08   :  { %2322 = vmatpush3.bf16.msra.mxu0 %v2640_v39  ;;  %2149 = vmatprep.mubr.msk.f32.mxu0 %vm2521_vm1, %v2522_v4 }
 0xb09   :  { %2323 = vmatprep.subr.bf16.mxu0 %v2520_v3  ;;  %v890_v49 = vpop.permute.xlu1 %889 }
 0xb0a   :  { %v892_v50 = vsel %vm176_vm2, %v886_v47, %v890_v49 }
 0xb0b   :  { %2120 = vmatmul.mubr.msk.f32.vlgmr.msra.gmra.mrb[6].mxu1 %vm280_vm3, %v892_v50 }
 0xb0c   :  { %2325 = vmatpush3.bf16.msra.mxu0 %v2646_v41  ;;  %2334 = vmatpush3.bf16.msra.mxu1 %v2593_v8 }
 0xb0d   :  { %2326 = vmatprep.subr.bf16.mxu0 %v2520_v3  ;;  %2335 = vmatprep.subr.bf16.mxu1 %v2520_v3 }
 0xb0e   :  { %2160 = vmatprep.mubr.msk.f32.mxu1 %vm2521_vm1, %v2522_v4 }
 0xb10   :  { %2328 = vmatpush3.bf16.msra.mxu0 %v2656_v44  ;;  %2337 = vmatpush3.bf16.msra.mxu1 %v2608_v12 }
 0xb11   :  { %2329 = vmatprep.subr.bf16.mxu0 %v2520_v3  ;;  %2338 = vmatprep.subr.bf16.mxu1 %v2520_v3 }
 0xb14   :  { %2331 = vmatpush3.bf16.msra.mxu0 %v2667_v48 }
 0xb15   :  { %2350 = vmatprep.subr.bf16.mxu0 %v2520_v3 }
 0xbda   :  { %v1059_v52 = vpop.f32.mrb[12].mxu0 }
 0xbdb   :  { %v1063_v54 = vadd.f32 %v1059_v52, %v990_v51  ;;  %v2132_v55 = vpop.f32.mrb[13].mxu0 }
 0xbdd   :  { %2448 = vtanh.f32 %v1063_v54  ;;  %v1860_v61 = vmul.f32 -1.442695, %v1063_v54 }
 0xbde   :  { %v962_v56 = vpop.f32.mrb[6].mxu1 }
 0xbdf   :  { %v963_v57 = vadd.f32 %v2695_v53, %v962_v56  ;;  %v2121_v58 = vpop.f32.mrb[7].mxu1 }
 0xbe1   :  { %2450 = vtanh.f32 %v963_v57  ;;  %v1858_v62 = vmul.f32 -1.442695, %v963_v57 }
 0xbe2   :  { %2452 = vpow2.f32 %v1860_v61 }
 0xbe3   :  { %2454 = vpow2.f32 %v1858_v62 }
 0xbe7   :  { %v2449_v59 = vpop.eup %2448 }
 0xbe8   :  { %1073 = vrot.lane.b32.xlu1 %v2449_v59, %s2523_s22 }
 0xbeb   :  { %v2451_v60 = vpop.eup %2450 }
 0xbec   :  { %975 = vrot.lane.b32.xlu0 %v2451_v60, %s2523_s22  ;;  %v2453_v63 = vpop.eup %2452 }
 0xbed   :  { %v1067_v0 = vadd.f32 1.0, %v2453_v63  ;;  %v2455_v1 = vpop.eup %2454 }
 0xbee   :  { %v969_v2 = vadd.f32 1.0, %v2455_v1 }
 0xbef   :  { %2456 = vrcp.f32 %v1067_v0 }
 0xbf0   :  { %2458 = vrcp.f32 %v969_v2 }
 0xbf9   :  { %v2457_v5 = vpop.eup %2456 }
 0xbfa   :  { %v2459_v9 = vpop.eup %2458  ;;  %v1071_v13 = vmul.f32 %v2457_v5, %v2774_v34 }
 0xbfb   :  { %v973_v16 = vmul.f32 %v2459_v9, %v2778_v37 }
 0xc5a   :  { %v1074_v6 = vpop.permute.xlu1 %1073 }
 0xc5b   :  { %v1076_v7 = vmul.f32 %v2457_v5, %v1074_v6 }
 0xc5d   :  { %1078 = vrot.lane.b32.xlu1 %v1076_v7, %s2523_s22  ;;  %v1398_v7 = vld [vmem:[#allocation2 + $0x18] sm:$0xf] }
 0xc5e   :  { %v976_v10 = vpop.permute.xlu0 %975 }
 0xc5f   :  { %v978_v11 = vmul.f32 %v2459_v9, %v976_v10 }
 0xc61   :  { %980 = vrot.lane.b32.xlu0 %v978_v11, %s2523_s22 }
 0xccf   :  { %v1079_v14 = vpop.permute.xlu1 %1078 }
 0xcd0   :  { %v2810_v15 = vadd.f32 %v1079_v14, %v1071_v13 }
 0xcd2   :  { %2460 = vtanh.f32 %v2810_v15 }
 0xcd3   :  { %v981_v17 = vpop.permute.xlu0 %980 }
 0xcd4   :  { %v2814_v18 = vadd.f32 %v981_v17, %v973_v16 }
 0xcd6   :  { %2462 = vtanh.f32 %v2814_v18 }
 0xcdc   :  { %v2461_v19 = vpop.eup %2460 }
 0xcdd   :  { %1084 = vrot.lane.b32.xlu1 %v2461_v19, %s2523_s22 }
 0xce0   :  { %v2463_v20 = vpop.eup %2462 }
 0xce1   :  { %986 = vrot.lane.b32.xlu0 %v2463_v20, %s2523_s22 }
 0xd4f   :  { %v1085_v21 = vpop.permute.xlu1 %1084 }
 0xd50   :  { %v1087_v22 = vmul.f32 %v2457_v5, %v1085_v21 }
 0xd52   :  { %1089 = vrot.lane.b32.xlu0 %v1087_v22, %s2524_s15 }
 0xd53   :  { %v987_v23 = vpop.permute.xlu0 %986 }
 0xd54   :  { %v989_v24 = vmul.f32 %v2459_v9, %v987_v23 }
 0xd56   :  { %1093 = vrot.lane.b32.xlu1 %v989_v24, %s2525_s5 }
 0xdc4   :  { %v1090_v25 = vpop.permute.xlu0 %1089 }
 0xdc5   :  { %2161 = vmatmul.mubr.msk.f32.vlgmr.msra.gmra.mrb[8].mxu1 %vm176_vm2, %v1090_v25 }
 0xdc6   :  { %2340 = vmatpush3.bf16.msra.mxu1 %v2640_v39  ;;  %2179 = vmatprep.mubr.msk.f32.mxu1 %vm2521_vm1, %v2522_v4 }
 0xdc7   :  { %2341 = vmatprep.subr.bf16.mxu1 %v2520_v3 }
 0xdc8   :  { %v1094_v26 = vpop.permute.xlu1 %1093 }
 0xdc9   :  { %v1096_v27 = vsel %vm176_vm2, %v1090_v25, %v1094_v26 }
 0xdca   :  { %2343 = vmatpush3.bf16.msra.mxu1 %v2646_v41  ;;  %2150 = vmatmul.mubr.msk.f32.vlgmr.msra.gmra.mrb[14].mxu0 %vm280_vm3, %v1096_v27 }
 0xdcb   :  { %2344 = vmatprep.subr.bf16.mxu1 %v2520_v3  ;;  %2352 = vmatpush3.bf16.msra.mxu0 %v2593_v8 }
 0xdcc   :  { %2190 = vmatprep.mubr.msk.f32.mxu0 %vm2521_vm1, %v2522_v4  ;;  %2353 = vmatprep.subr.bf16.mxu0 %v2520_v3 }
 0xdce   :  { %2346 = vmatpush3.bf16.msra.mxu1 %v2656_v44 }
 0xdcf   :  { %2347 = vmatprep.subr.bf16.mxu1 %v2520_v3  ;;  %2355 = vmatpush3.bf16.msra.mxu0 %v2608_v12 }
 0xdd0   :  { %2356 = vmatprep.subr.bf16.mxu0 %v2520_v3 }
 0xdd2   :  { %2349 = vmatpush3.bf16.msra.mxu1 %v2667_v48 }
 0xdd3   :  { %2368 = vmatprep.subr.bf16.mxu1 %v2520_v3 }
 0xe98   :  { %v1263_v29 = vpop.f32.mrb[8].mxu1 }
 0xe99   :  { %v1267_v30 = vadd.f32 %v1263_v29, %v1194_v28  ;;  %v2162_v31 = vpop.f32.mrb[9].mxu1 }
 0xe9b   :  { %2464 = vtanh.f32 %v1267_v30  ;;  %v1864_v37 = vmul.f32 -1.442695, %v1267_v30 }
 0xe9d   :  { %v1166_v32 = vpop.f32.mrb[14].mxu0 }
 0xe9e   :  { %v1167_v33 = vadd.f32 %v2695_v53, %v1166_v32  ;;  %v2151_v34 = vpop.f32.mrb[15].mxu0 }
 0xea0   :  { %2466 = vtanh.f32 %v1167_v33  ;;  %v1862_v38 = vmul.f32 -1.442695, %v1167_v33 }
 0xea1   :  { %2468 = vpow2.f32 %v1864_v37 }
 0xea2   :  { %2470 = vpow2.f32 %v1862_v38 }
 0xea5   :  { %v2465_v35 = vpop.eup %2464 }
 0xea6   :  { %1277 = vrot.lane.b32.xlu1 %v2465_v35, %s2523_s22 }
 0xeaa   :  { %v2467_v36 = vpop.eup %2466 }
 0xeab   :  { %1179 = vrot.lane.b32.xlu0 %v2467_v36, %s2523_s22  ;;  %v2469_v40 = vpop.eup %2468 }
 0xeac   :  { %v1271_v42 = vadd.f32 1.0, %v2469_v40  ;;  %v2471_v43 = vpop.eup %2470 }
 0xead   :  { %v1173_v45 = vadd.f32 1.0, %v2471_v43 }
 0xeae   :  { %2472 = vrcp.f32 %v1271_v42 }
 0xeaf   :  { %2474 = vrcp.f32 %v1173_v45 }
 0xeb8   :  { %v2473_v46 = vpop.eup %2472 }
 0xeb9   :  { %v2475_v50 = vpop.eup %2474  ;;  %v1275_v54 = vmul.f32 %v2473_v46, %v2810_v15 }
 0xeba   :  { %v1177_v57 = vmul.f32 %v2475_v50, %v2814_v18 }
 0xf18   :  { %v1278_v47 = vpop.permute.xlu1 %1277 }
 0xf19   :  { %v1280_v49 = vmul.f32 %v2473_v46, %v1278_v47 }
 0xf1b   :  { %1282 = vrot.lane.b32.xlu1 %v1280_v49, %s2523_s22 }
 0xf1d   :  { %v1180_v51 = vpop.permute.xlu0 %1179 }
 0xf1e   :  { %v1182_v52 = vmul.f32 %v2475_v50, %v1180_v51 }
 0xf20   :  { %1184 = vrot.lane.b32.xlu0 %v1182_v52, %s2523_s22 }
 0xf8d   :  { %v1283_v55 = vpop.permute.xlu1 %1282 }
 0xf8e   :  { %v2846_v56 = vadd.f32 %v1283_v55, %v1275_v54 }
 0xf90   :  { %2476 = vtanh.f32 %v2846_v56 }
 0xf92   :  { %v1185_v58 = vpop.permute.xlu0 %1184 }
 0xf93   :  { %v2850_v59 = vadd.f32 %v1185_v58, %v1177_v57 }
 0xf95   :  { %2478 = vtanh.f32 %v2850_v59 }
 0xf9a   :  { %v2477_v60 = vpop.eup %2476 }
 0xf9b   :  { %1288 = vrot.lane.b32.xlu1 %v2477_v60, %s2523_s22 }
 0xf9f   :  { %v2479_v61 = vpop.eup %2478 }
 0xfa0   :  { %1190 = vrot.lane.b32.xlu0 %v2479_v61, %s2523_s22 }
0x100d   :  { %v1289_v62 = vpop.permute.xlu1 %1288 }
0x100e   :  { %v1291_v63 = vmul.f32 %v2473_v46, %v1289_v62 }
0x1010   :  { %1293 = vrot.lane.b32.xlu0 %v1291_v63, %s2524_s15 }
0x1012   :  { %v1191_v0 = vpop.permute.xlu0 %1190 }
0x1013   :  { %v1193_v1 = vmul.f32 %v2475_v50, %v1191_v0 }
0x1015   :  { %1297 = vrot.lane.b32.xlu1 %v1193_v1, %s2525_s5 }
0x1082   :  { %v1294_v2 = vpop.permute.xlu0 %1293 }
0x1083   :  { %2191 = vmatmul.mubr.msk.f32.vlgmr.msra.gmra.mrb[16].mxu0 %vm176_vm2, %v1294_v2 }
0x1084   :  { %2358 = vmatpush3.bf16.msra.mxu0 %v2640_v39  ;;  %2209 = vmatprep.mubr.msk.f32.mxu0 %vm2521_vm1, %v2522_v4 }
0x1085   :  { %2359 = vmatprep.subr.bf16.mxu0 %v2520_v3 }
0x1087   :  { %v1298_v5 = vpop.permute.xlu1 %1297 }
0x1088   :  { %2361 = vmatpush3.bf16.msra.mxu0 %v2646_v41  ;;  %v1300_v6 = vsel %vm176_vm2, %v1294_v2, %v1298_v5 }
0x1089   :  { %2362 = vmatprep.subr.bf16.mxu0 %v2520_v3  ;;  %2180 = vmatmul.mubr.msk.f32.vlgmr.msra.gmra.mrb[10].mxu1 %vm280_vm3, %v1300_v6 }
0x108a   :  { %2370 = vmatpush3.bf16.msra.mxu1 %v2593_v8  ;;  %2220 = vmatprep.mubr.msk.f32.mxu1 %vm2521_vm1, %v2522_v4 }
0x108b   :  { %2371 = vmatprep.subr.bf16.mxu1 %v2520_v3 }
0x108c   :  { %2364 = vmatpush3.bf16.msra.mxu0 %v2656_v44 }
0x108d   :  { %2365 = vmatprep.subr.bf16.mxu0 %v2520_v3 }
0x108e   :  { %2373 = vmatpush3.bf16.msra.mxu1 %v2608_v12 }
0x108f   :  { %2374 = vmatprep.subr.bf16.mxu1 %v2520_v3 }
0x1090   :  { %2367 = vmatpush3.bf16.msra.mxu0 %v2667_v48 }
0x1156   :  { %v1467_v9 = vpop.f32.mrb[16].mxu0 }
0x1157   :  { %v1471_v10 = vadd.f32 %v1467_v9, %v1398_v7  ;;  %v2192_v11 = vpop.f32.mrb[17].mxu0 }
0x1159   :  { %2480 = vtanh.f32 %v1471_v10  ;;  %v1868_v12 = vmul.f32 -1.442695, %v1471_v10 }
0x115c   :  { %v1370_v8 = vpop.f32.mrb[10].mxu1 }
0x115d   :  { %v1371_v13 = vadd.f32 %v2695_v53, %v1370_v8  ;;  %v2181_v14 = vpop.f32.mrb[11].mxu1 }
0x115f   :  { %2482 = vtanh.f32 %v1371_v13  ;;  %v1866_v17 = vmul.f32 -1.442695, %v1371_v13 }
0x1160   :  { %2484 = vpow2.f32 %v1868_v12 }
0x1161   :  { %2486 = vpow2.f32 %v1866_v17 }
0x1163   :  { %v2481_v15 = vpop.eup %2480 }
0x1164   :  { %1481 = vrot.lane.b32.xlu1 %v2481_v15, %s2523_s22 }
0x1169   :  { %v2483_v16 = vpop.eup %2482 }
0x116a   :  { %1383 = vrot.lane.b32.xlu0 %v2483_v16, %s2523_s22  ;;  %v2485_v18 = vpop.eup %2484 }
0x116b   :  { %v1475_v19 = vadd.f32 1.0, %v2485_v18  ;;  %v2487_v20 = vpop.eup %2486 }
0x116c   :  { %v1377_v21 = vadd.f32 1.0, %v2487_v20 }
0x116d   :  { %2488 = vrcp.f32 %v1475_v19 }
0x116e   :  { %2490 = vrcp.f32 %v1377_v21 }
0x1177   :  { %v2489_v22 = vpop.eup %2488 }
0x1178   :  { %v2491_v25 = vpop.eup %2490  ;;  %v1479_v28 = vmul.f32 %v2489_v22, %v2846_v56 }
0x1179   :  { %v1381_v31 = vmul.f32 %v2491_v25, %v2850_v59 }
0x11d6   :  { %v1482_v23 = vpop.permute.xlu1 %1481 }
0x11d7   :  { %v1484_v24 = vmul.f32 %v2489_v22, %v1482_v23 }
0x11d9   :  { %1486 = vrot.lane.b32.xlu1 %v1484_v24, %s2523_s22 }
0x11dc   :  { %v1384_v26 = vpop.permute.xlu0 %1383 }
0x11dd   :  { %v1386_v27 = vmul.f32 %v2491_v25, %v1384_v26  ;;  %v1875_v26 = vld [vmem:[%s2930_s6] ss:$0 sm:$0xff] }
0x11df   :  { %1388 = vrot.lane.b32.xlu0 %v1386_v27, %s2523_s22 }
0x124b   :  { %v1487_v29 = vpop.permute.xlu1 %1486 }
0x124c   :  { %v1489_v30 = vadd.f32 %v1487_v29, %v1479_v28 }
0x124e   :  { %2492 = vtanh.f32 %v1489_v30 }
0x1251   :  { %v1389_v32 = vpop.permute.xlu0 %1388 }
0x1252   :  { %v1391_v33 = vadd.f32 %v1389_v32, %v1381_v31 }
0x1254   :  { %2494 = vtanh.f32 %v1391_v33 }
0x1258   :  { %v2493_v34 = vpop.eup %2492 }
0x1259   :  { %1492 = vrot.lane.b32.xlu1 %v2493_v34, %s2523_s22 }
0x125e   :  { %v2495_v35 = vpop.eup %2494 }
0x125f   :  { %1394 = vrot.lane.b32.xlu0 %v2495_v35, %s2523_s22 }
0x12cb   :  { %v1493_v36 = vpop.permute.xlu1 %1492 }
0x12cc   :  { %v1495_v37 = vmul.f32 %v2489_v22, %v1493_v36 }
0x12ce   :  { %1497 = vrot.lane.b32.xlu0 %v1495_v37, %s2524_s15 }
0x12d1   :  { %v1395_v38 = vpop.permute.xlu0 %1394 }
0x12d2   :  { %v1397_v40 = vmul.f32 %v2491_v25, %v1395_v38 }
0x12d4   :  { %1501 = vrot.lane.b32.xlu1 %v1397_v40, %s2525_s5 }
0x1340   :  { %v1498_v42 = vpop.permute.xlu0 %1497 }
0x1341   :  { %2221 = vmatmul.mubr.msk.f32.vlgmr.msra.gmra.mrb[12].mxu1 %vm176_vm2, %v1498_v42 }
0x1342   :  { %2376 = vmatpush3.bf16.msra.mxu1 %v2640_v39  ;;  %2239 = vmatprep.mubr.msk.f32.mxu1 %vm2521_vm1, %v2522_v4  ;;  %v1602_v39 = vld [vmem:[#allocation2 + $0x1c] sm:$0xf] }
0x1343   :  { %2377 = vmatprep.subr.bf16.mxu1 %v2520_v3 }
0x1346   :  { %2379 = vmatpush3.bf16.msra.mxu1 %v2646_v41  ;;  %v1502_v43 = vpop.permute.xlu1 %1501 }
0x1347   :  { %2380 = vmatprep.subr.bf16.mxu1 %v2520_v3  ;;  %v1504_v45 = vsel %vm176_vm2, %v1498_v42, %v1502_v43 }
0x1348   :  { %2210 = vmatmul.mubr.msk.f32.vlgmr.msra.gmra.mrb[18].mxu0 %vm280_vm3, %v1504_v45 }
0x134a   :  { %2382 = vmatpush3.bf16.msra.mxu1 %v2656_v44 }
0x134b   :  { %2383 = vmatprep.subr.bf16.mxu1 %v2520_v3 }
0x134e   :  { %2385 = vmatpush3.bf16.msra.mxu1 %v2667_v48 }
0x1414   :  { %v1671_v46 = vpop.f32.mrb[12].mxu1 }
0x1415   :  { %v1675_v4 = vadd.f32 %v1671_v46, %v1602_v39  ;;  %v2222_v47 = vpop.f32.mrb[13].mxu1 }
0x1417   :  { %2496 = vtanh.f32 %v1675_v4  ;;  %v1872_v44 = vmul.f32 -1.442695, %v1675_v4 }
0x141b   :  { %v1574_v49 = vpop.f32.mrb[18].mxu0 }
0x141c   :  { %v1575_v41 = vadd.f32 %v2695_v53, %v1574_v49  ;;  %v2211_v50 = vpop.f32.mrb[19].mxu0 }
0x141e   :  { %2498 = vtanh.f32 %v1575_v41  ;;  %v1870_v3 = vmul.f32 -1.442695, %v1575_v41 }
0x141f   :  { %2500 = vpow2.f32 %v1872_v44 }
0x1420   :  { %2502 = vpow2.f32 %v1870_v3 }
0x1421   :  { %v2497_v51 = vpop.eup %2496 }
0x1422   :  { %1685 = vrot.lane.b32.xlu1 %v2497_v51, %s2523_s22 }
0x1428   :  { %v2499_v52 = vpop.eup %2498 }
0x1429   :  { %1587 = vrot.lane.b32.xlu0 %v2499_v52, %s2523_s22  ;;  %v2501_v48 = vpop.eup %2500 }
0x142a   :  { %v1679_v54 = vadd.f32 1.0, %v2501_v48  ;;  %v2503_v55 = vpop.eup %2502 }
0x142b   :  { %v1581_v56 = vadd.f32 1.0, %v2503_v55 }
0x142c   :  { %2504 = vrcp.f32 %v1679_v54 }
0x142d   :  { %2506 = vrcp.f32 %v1581_v56 }
0x1436   :  { %v2505_v57 = vpop.eup %2504 }
0x1437   :  { %v2507_v60 = vpop.eup %2506  ;;  %v1683_v63 = vmul.f32 %v2505_v57, %v1489_v30  ;;  %v13_v30 = vstv %s2931_s7 }
0x1438   :  { %v1585_v2 = vmul.f32 %v2507_v60, %v1391_v33  ;;  %14 = vst [vmem:[#allocation3] sm:$0x1] %v13_v30 }
0x143f   :  { %v1876_v37 = vld [vmem:[#allocation3] ss:$0 sm:$0xff] }
0x1494   :  { %v1686_v58 = vpop.permute.xlu1 %1685 }
0x1495   :  { %v1688_v59 = vmul.f32 %v2505_v57, %v1686_v58 }
0x1497   :  { %1690 = vrot.lane.b32.xlu1 %v1688_v59, %s2523_s22 }
0x149b   :  { %v1588_v61 = vpop.permute.xlu0 %1587 }
0x149c   :  { %v1590_v62 = vmul.f32 %v2507_v60, %v1588_v61 }
0x149e   :  { %1592 = vrot.lane.b32.xlu0 %v1590_v62, %s2523_s22 }
0x1509   :  { %v1691_v0 = vpop.permute.xlu1 %1690 }
0x150a   :  { %v1693_v1 = vadd.f32 %v1691_v0, %v1683_v63 }
0x150c   :  { %2508 = vtanh.f32 %v1693_v1 }
0x1510   :  { %v1593_v5 = vpop.permute.xlu0 %1592 }
0x1511   :  { %v1595_v6 = vadd.f32 %v1593_v5, %v1585_v2 }
0x1513   :  { %2510 = vtanh.f32 %v1595_v6 }
0x1516   :  { %v2509_v7 = vpop.eup %2508 }
0x1517   :  { %1696 = vrot.lane.b32.xlu1 %v2509_v7, %s2523_s22 }
0x151d   :  { %v2511_v9 = vpop.eup %2510 }
0x151e   :  { %1598 = vrot.lane.b32.xlu0 %v2511_v9, %s2523_s22 }
0x1589   :  { %v1697_v10 = vpop.permute.xlu1 %1696 }
0x158a   :  { %v1699_v11 = vmul.f32 %v2505_v57, %v1697_v10 }
0x158c   :  { %1701 = vrot.lane.b32.xlu0 %v1699_v11, %s2524_s15 }
0x1590   :  { %v1599_v8 = vpop.permute.xlu0 %1598 }
0x1591   :  { %v1601_v13 = vmul.f32 %v2507_v60, %v1599_v8 }
0x1593   :  { %1705 = vrot.lane.b32.xlu1 %v1601_v13, %s2525_s5 }
0x15fe   :  { %v1702_v14 = vpop.permute.xlu0 %1701 }
0x1605   :  { %v1706_v15 = vpop.permute.xlu1 %1705 }
0x1606   :  { %v1708_v16 = vsel %vm176_vm2, %v1702_v14, %v1706_v15 }
0x1607   :  { %2240 = vmatmul.mubr.msk.f32.vlgmr.msra.gmra.mrb[14].mxu1 %vm280_vm3, %v1708_v16 }
0x16da   :  { %v1778_v12 = vpop.f32.mrb[14].mxu1 }
0x16db   :  { %v1779_v17 = vadd.f32 %v2695_v53, %v1778_v12  ;;  %v2241_v18 = vpop.f32.mrb[15].mxu1 }
0x16dd   :  { %2512 = vtanh.f32 %v1779_v17  ;;  %v1874_v20 = vmul.f32 -1.442695, %v1779_v17 }
0x16df   :  { %2514 = vpow2.f32 %v1874_v20 }
0x16e7   :  { %v2513_v19 = vpop.eup %2512 }
0x16e8   :  { %1791 = vrot.lane.b32.xlu0 %v2513_v19, %s2523_s22 }
0x16e9   :  { %v2515_v21 = vpop.eup %2514 }
0x16ea   :  { %v1785_v22 = vadd.f32 1.0, %v2515_v21 }
0x16ec   :  { %2516 = vrcp.f32 %v1785_v22 }
0x16f6   :  { %v2517_v23 = vpop.eup %2516 }
0x16f7   :  { %v1789_v53 = vmul.f32 %v2517_v23, %v1595_v6 }
0x175a   :  { %v1792_v24 = vpop.permute.xlu0 %1791 }
0x175b   :  { %v1794_v25 = vmul.f32 %v2517_v23, %v1792_v24 }
0x175d   :  { %1796 = vrot.lane.b32.xlu1 %v1794_v25, %s2523_s22 }
0x1761   :  { %1812 = vrot.lane.b32.xlu1 %v1875_v26, %s2524_s15 }
0x17cf   :  { %v1797_v27 = vpop.permute.xlu1 %1796 }
0x17d0   :  { %v1799_v28 = vadd.f32 %v1797_v27, %v1789_v53 }
0x17d2   :  { %2518 = vtanh.f32 %v1799_v28 }
0x17d3   :  { %v1813_v32 = vpop.permute.xlu1 %1812 }
0x17dc   :  { %v2519_v29 = vpop.eup %2518 }
0x17dd   :  { %1802 = vrot.lane.b32.xlu0 %v2519_v29, %s2523_s22 }
0x184f   :  { %v1803_v31 = vpop.permute.xlu0 %1802 }
0x1850   :  { %v1805_v33 = vmul.f32 %v2517_v23, %v1803_v31 }
0x1852   :  { %v1815_v34 = vmul.f32 %v1813_v32, %v1805_v33 }
0x1854   :  { %1817 = vrot.lane.b32.xlu0 %v1815_v34, %s2524_s15 }
0x18c6   :  { %v1818_v35 = vpop.permute.xlu0 %1817 }
0x18c7   :  { %v1821_v36 = vsel %vm1820_vm4, %v1818_v35, 0.0 }
0x18c8   :  { %1822 = vadd.xlane.f32.xlu1 %v1821_v36 }
0x1955   :  { %v1823_v38 = vpop.xlane.xlu1 %1822 }
0x1956   :  { %v1831_v40 = vadd.f32 %v1876_v37, %v1823_v38 }
0x1958   :  { %1833 = vst.msk [vmem:[%s2932_s8] sm:$0xf] %vm1832_vm5, %v1831_v40 }

</bundles_post_ra>
